<compile_context>
chip_gen: v6e
topology: v6e:2x2x1
jax: 0.10.0
libtpu: 0.0.40
codegen_flags: <defaults>
</compile_context>

<pallas_src>
import functools

import jax
import jax.numpy as jnp
from jax.experimental import pallas as pl
from jax.experimental.pallas import tpu as pltpu


def _round_up(v, m):
    return -(-v // m) * m


def _conv_kernel(x_ref, w_ref, b_ref, o_ref, *, KH, KW, S, HR, WJP, NCOLS, NEED):
    """One (image, COUT-tile) grid step.

    x_ref : (1, CIN, L)            phase-decimated, lane-flattened padded image
    w_ref : (KH, KW, TCOUT, CIN)   weight taps (OIHW -> (kh, kw, co, ci))
    b_ref : (TCOUT, 1)             f32 bias
    o_ref : (1, TCOUT, NCOLS)      lane-dense wide output, NCOLS = HO * WJP
    """
    x = x_ref[0]                                          # (CIN, L)

    # One cross-lane shift per distinct q = kw // S, computed once and reused
    # by every (kh, kw) tap.  q == 0 is a free view.
    n_shift = (KW - 1) // S + 1
    shifted = [x[:, q:q + NEED] for q in range(n_shift)]

    acc = None
    for kh in range(KH):
        ph, qh = kh % S, kh // S
        for kw in range(KW):
            p, q = kw % S, kw // S
            base = ((p * S + ph) * HR + qh) * WJP         # static, 128-aligned
            tap = shifted[q][:, base:base + NCOLS]        # (CIN, NCOLS), aligned
            part = jnp.dot(w_ref[kh, kw], tap,
                           preferred_element_type=jnp.float32)
            acc = part if acc is None else acc + part
    acc = acc + b_ref[...]                                # bias add in f32
    o_ref[0] = acc.astype(o_ref.dtype)


def _vmem_capacity_bytes():
    try:
        return int(pltpu.get_tpu_info().vmem_capacity_bytes)
    except Exception:
        return 64 << 20                                   # conservative (v7x)


def conv_layer_pallas(x, weight, bias, *, stride, compute_dtype=jnp.bfloat16):
    """Conv2d with padding = floor(kernel_size/2), matching the PyTorch module.

    x      : (N, CIN, H, W)        NCHW
    weight : (COUT, CIN, KH, KW)   OIHW (PyTorch layout)
    bias   : (COUT,)
    """
    N, CIN, H, W = x.shape
    COUT, CIN_W, KH, KW = weight.shape
    assert CIN_W == CIN
    S = int(stride)
    pad = KH // 2                                         # int(floor(kernel_size/2))

    HO = (H + 2 * pad - KH) // S + 1
    WO = (W + 2 * pad - KW) // S + 1
    HR = HO + (KH - 1) // S                               # decimated rows needed
    WJ = WO + (KW - 1) // S                               # decimated cols needed
    WJP = _round_up(max(WJ, 1), 128)                      # 128-aligned row pitch
    NCOLS = HO * WJP                                      # wide output row span
    NEED = S * S * HR * WJP                               # slab span taps may read
    L = NEED + 128                                        # zero tail for q-shifts

    out_dtype = x.dtype
    cdt = jnp.dtype(compute_dtype) if compute_dtype is not None else jnp.dtype(x.dtype)

    # ---- input layout: cast, pad, phase-decimate, flatten (one XLA pass) ----
    xc = x.astype(cdt)
    xp = jnp.pad(xc, ((0, 0), (0, 0),
                      (pad, max(0, HR * S - H - pad)),
                      (pad, max(0, WJP * S - W - pad))))
    xp = xp[:, :, :HR * S, :WJP * S]
    # padded[h, w] with h = rr*S + ph, w = j*S + p  ->  flat ((p*S+ph)*HR+rr)*WJP + j
    xp = xp.reshape(N, CIN, HR, S, WJP, S)
    xp = jnp.transpose(xp, (0, 1, 5, 3, 2, 4))            # (N, CIN, S(p), S(ph), HR, WJP)
    x_flat = xp.reshape(N, CIN, NEED)
    x_flat = jnp.pad(x_flat, ((0, 0), (0, 0), (0, L - NEED)))

    # ---- weights / bias -----------------------------------------------------
    w_k = jnp.transpose(weight, (2, 3, 0, 1)).astype(cdt)  # (KH, KW, COUT, CIN)
    b2 = bias.reshape(COUT, 1).astype(jnp.float32)

    # ---- COUT tiling: >=2 parallel grid steps for large layers (v7x 2 TCs) --
    TCOUT = COUT
    for cand in (256, 128, 64):
        if COUT > cand and COUT % cand == 0:
            TCOUT = cand
            break
    n_ct = COUT // TCOUT

    kernel = functools.partial(_conv_kernel, KH=KH, KW=KW, S=S, HR=HR,
                               WJP=WJP, NCOLS=NCOLS, NEED=NEED)

    # ---- advisory cost estimate ---------------------------------------------
    c_item = cdt.itemsize
    o_item = jnp.dtype(out_dtype).itemsize
    flops = 2 * N * COUT * NCOLS * KH * KW * CIN
    bytes_accessed = (N * CIN * L * c_item + KH * KW * COUT * CIN * c_item
                      + COUT * 4 + N * COUT * NCOLS * o_item)

    # ---- generation-aware VMEM budget ---------------------------------------
    cin_sub = _round_up(CIN, 8)
    n_shift = (KW - 1) // S + 1
    x_blk = cin_sub * L * c_item
    w_blk = KH * KW * _round_up(TCOUT, 8) * _round_up(CIN, 128) * c_item
    o_blk = _round_up(TCOUT, 8) * NCOLS * o_item
    live = (n_shift * cin_sub * NEED * c_item             # shifted slabs
            + _round_up(TCOUT, 8) * NCOLS * 4             # f32 accumulator
            + cin_sub * NCOLS * c_item)                   # one tap in flight
    est = 2 * (x_blk + o_blk + w_blk) + live + (8 << 20)
    cap = _vmem_capacity_bytes()
    vmem_limit = int(min(max(est, 16 << 20), (cap * 3) // 4))

    out_wide = pl.pallas_call(
        kernel,
        out_shape=jax.ShapeDtypeStruct((N, COUT, NCOLS), out_dtype),
        grid_spec=pltpu.PrefetchScalarGridSpec(
            num_scalar_prefetch=0,
            grid=(N, n_ct),
            in_specs=[
                pl.BlockSpec((1, CIN, L), lambda n, c: (n, 0, 0)),
                pl.BlockSpec((KH, KW, TCOUT, CIN), lambda n, c: (0, 0, c, 0)),
                pl.BlockSpec((TCOUT, 1), lambda n, c: (c, 0)),
            ],
            out_specs=pl.BlockSpec((1, TCOUT, NCOLS), lambda n, c: (n, c, 0)),
        ),
        compiler_params=pltpu.CompilerParams(
            dimension_semantics=("parallel", "parallel"),
            vmem_limit_bytes=vmem_limit),
        cost_estimate=pl.CostEstimate(
            flops=flops, transcendentals=0, bytes_accessed=bytes_accessed),
    )(x_flat, w_k, b2)

    # Free reshape (contiguous dims); the only remaining copy is the thin slice
    # restoring the module's exact (N, COUT, HO, WO) output shape.
    return out_wide.reshape(N, COUT, HO, WJP)[:, :, :, :WO]


def conv_layer_reference(x, weight, bias, *, stride):
    """Pure-JAX reference (lax conv, OIHW weights) for correctness checking."""
    KH = weight.shape[2]
    pad = KH // 2
    out = jax.lax.conv_general_dilated(
        x, weight,
        window_strides=(stride, stride),
        padding=((pad, pad), (pad, pad)),
        dimension_numbers=("NCHW", "OIHW", "NCHW"))
    return out + bias.reshape(1, -1, 1, 1)


if __name__ == "__main__":
    # ConvLayer(in_channels=4, out_channels=8, kernel_size=3, stride=s)
    N, CIN, H, W = 2, 4, 16, 16
    COUT, K = 8, 3

    key = jax.random.PRNGKey(0)
    kx, kwt, kb = jax.random.split(key, 3)
    x = jax.random.normal(kx, (N, CIN, H, W), dtype=jnp.float32)
    weight = 0.1 * jax.random.normal(kwt, (COUT, CIN, K, K), dtype=jnp.float32)
    bias = 0.1 * jax.random.normal(kb, (COUT,), dtype=jnp.float32)

    for STRIDE in (1, 2):
        ref = conv_layer_reference(x, weight, bias, stride=STRIDE)

        # f32 compute path: closely matches the XLA conv.
        out_f32 = jax.block_until_ready(
            conv_layer_pallas(x, weight, bias, stride=STRIDE,
                              compute_dtype=jnp.float32))
        assert out_f32.shape == ref.shape, (out_f32.shape, ref.shape)
        assert jnp.allclose(out_f32, ref, atol=1e-3, rtol=1e-3), \
            f"f32 path mismatch vs lax conv (stride={STRIDE})"

        # Default bf16-operand path (f32 accumulation): looser tolerance.
        out_bf16 = jax.block_until_ready(
            conv_layer_pallas(x, weight, bias, stride=STRIDE))
        assert out_bf16.shape == ref.shape
        assert jnp.allclose(out_bf16, ref, atol=5e-2, rtol=5e-2), \
            f"bf16 path mismatch vs lax conv (stride={STRIDE})"

    print("KERNEL_OK")
</pallas_src>

<mosaic_0001>
module attributes {stable_mosaic.version = 11 : i64} {
  func.func @_conv_kernel(%arg0: i32, %arg1: i32, %arg2: memref<1x4x2432xf32, #tpu.memory_space<vmem>>, %arg3: memref<3x3x8x4xf32, #tpu.memory_space<vmem>>, %arg4: memref<8x1xf32, #tpu.memory_space<vmem>>, %arg5: memref<1x8x2048xf32, #tpu.memory_space<vmem>>) attributes {dimension_semantics = [#tpu.dimension_semantics<parallel>, #tpu.dimension_semantics<parallel>], iteration_bounds = array<i64: 2, 1>, scalar_prefetch = 0 : i64, scratch_operands = 0 : i64, tpu.core_type = #tpu.core_type<tc>, window_params = [{transform_indices = @transform_0, window_bounds = array<i64: 1, 4, 2432>}, {transform_indices = @transform_1, window_bounds = array<i64: 3, 3, 8, 4>}, {transform_indices = @transform_2, window_bounds = array<i64: 8, 1>}, {transform_indices = @transform_3, window_bounds = array<i64: 1, 8, 2048>}]} {
    %c0 = arith.constant 0 : index
    %c0_0 = arith.constant 0 : index
    %c0_1 = arith.constant 0 : index
    %0 = vector.load %arg2[%c0, %c0_0, %c0_1] : memref<1x4x2432xf32, #tpu.memory_space<vmem>>, vector<1x4x2432xf32>
    %1 = vector.shape_cast %0 : vector<1x4x2432xf32> to vector<4x2432xf32>
    %2 = vector.extract_strided_slice %1 {offsets = [0, 0], sizes = [4, 2304], strides = [1, 1]} : vector<4x2432xf32> to vector<4x2304xf32>
    %3 = vector.extract_strided_slice %1 {offsets = [0, 1], sizes = [4, 2304], strides = [1, 1]} : vector<4x2432xf32> to vector<4x2304xf32>
    %4 = vector.extract_strided_slice %1 {offsets = [0, 2], sizes = [4, 2304], strides = [1, 1]} : vector<4x2432xf32> to vector<4x2304xf32>
    %5 = vector.extract_strided_slice %2 {offsets = [0, 0], sizes = [4, 2048], strides = [1, 1]} : vector<4x2304xf32> to vector<4x2048xf32>
    %c0_2 = arith.constant 0 : index
    %c0_3 = arith.constant 0 : index
    %c0_4 = arith.constant 0 : index
    %c0_5 = arith.constant 0 : index
    %6 = vector.load %arg3[%c0_2, %c0_3, %c0_4, %c0_5] : memref<3x3x8x4xf32, #tpu.memory_space<vmem>>, vector<1x1x8x4xf32>
    %7 = vector.shape_cast %6 : vector<1x1x8x4xf32> to vector<8x4xf32>
    %cst = arith.constant dense<0.000000e+00> : vector<8x2048xf32>
    %8 = tpu.matmul %7, %5, %cst {dimension_numbers = #tpu.dot_dimension_numbers<[1], [0], [0], [1], [0, 0, 1, 1], [], []>} : vector<8x4xf32>, vector<4x2048xf32>, vector<8x2048xf32> -> vector<8x2048xf32>
    %9 = vector.extract_strided_slice %3 {offsets = [0, 0], sizes = [4, 2048], strides = [1, 1]} : vector<4x2304xf32> to vector<4x2048xf32>
    %c0_6 = arith.constant 0 : index
    %c1 = arith.constant 1 : index
    %c0_7 = arith.constant 0 : index
    %c0_8 = arith.constant 0 : index
    %10 = vector.load %arg3[%c0_6, %c1, %c0_7, %c0_8] : memref<3x3x8x4xf32, #tpu.memory_space<vmem>>, vector<1x1x8x4xf32>
    %11 = vector.shape_cast %10 : vector<1x1x8x4xf32> to vector<8x4xf32>
    %cst_9 = arith.constant dense<0.000000e+00> : vector<8x2048xf32>
    %12 = tpu.matmul %11, %9, %cst_9 {dimension_numbers = #tpu.dot_dimension_numbers<[1], [0], [0], [1], [0, 0, 1, 1], [], []>} : vector<8x4xf32>, vector<4x2048xf32>, vector<8x2048xf32> -> vector<8x2048xf32>
    %13 = arith.addf %8, %12 : vector<8x2048xf32>
    %14 = vector.extract_strided_slice %4 {offsets = [0, 0], sizes = [4, 2048], strides = [1, 1]} : vector<4x2304xf32> to vector<4x2048xf32>
    %c0_10 = arith.constant 0 : index
    %c2 = arith.constant 2 : index
    %c0_11 = arith.constant 0 : index
    %c0_12 = arith.constant 0 : index
    %15 = vector.load %arg3[%c0_10, %c2, %c0_11, %c0_12] : memref<3x3x8x4xf32, #tpu.memory_space<vmem>>, vector<1x1x8x4xf32>
    %16 = vector.shape_cast %15 : vector<1x1x8x4xf32> to vector<8x4xf32>
    %cst_13 = arith.constant dense<0.000000e+00> : vector<8x2048xf32>
    %17 = tpu.matmul %16, %14, %cst_13 {dimension_numbers = #tpu.dot_dimension_numbers<[1], [0], [0], [1], [0, 0, 1, 1], [], []>} : vector<8x4xf32>, vector<4x2048xf32>, vector<8x2048xf32> -> vector<8x2048xf32>
    %18 = arith.addf %13, %17 : vector<8x2048xf32>
    %19 = vector.extract_strided_slice %2 {offsets = [0, 128], sizes = [4, 2048], strides = [1, 1]} : vector<4x2304xf32> to vector<4x2048xf32>
    %c1_14 = arith.constant 1 : index
    %c0_15 = arith.constant 0 : index
    %c0_16 = arith.constant 0 : index
    %c0_17 = arith.constant 0 : index
    %20 = vector.load %arg3[%c1_14, %c0_15, %c0_16, %c0_17] : memref<3x3x8x4xf32, #tpu.memory_space<vmem>>, vector<1x1x8x4xf32>
    %21 = vector.shape_cast %20 : vector<1x1x8x4xf32> to vector<8x4xf32>
    %cst_18 = arith.constant dense<0.000000e+00> : vector<8x2048xf32>
    %22 = tpu.matmul %21, %19, %cst_18 {dimension_numbers = #tpu.dot_dimension_numbers<[1], [0], [0], [1], [0, 0, 1, 1], [], []>} : vector<8x4xf32>, vector<4x2048xf32>, vector<8x2048xf32> -> vector<8x2048xf32>
    %23 = arith.addf %18, %22 : vector<8x2048xf32>
    %24 = vector.extract_strided_slice %3 {offsets = [0, 128], sizes = [4, 2048], strides = [1, 1]} : vector<4x2304xf32> to vector<4x2048xf32>
    %c1_19 = arith.constant 1 : index
    %c1_20 = arith.constant 1 : index
    %c0_21 = arith.constant 0 : index
    %c0_22 = arith.constant 0 : index
    %25 = vector.load %arg3[%c1_19, %c1_20, %c0_21, %c0_22] : memref<3x3x8x4xf32, #tpu.memory_space<vmem>>, vector<1x1x8x4xf32>
    %26 = vector.shape_cast %25 : vector<1x1x8x4xf32> to vector<8x4xf32>
    %cst_23 = arith.constant dense<0.000000e+00> : vector<8x2048xf32>
    %27 = tpu.matmul %26, %24, %cst_23 {dimension_numbers = #tpu.dot_dimension_numbers<[1], [0], [0], [1], [0, 0, 1, 1], [], []>} : vector<8x4xf32>, vector<4x2048xf32>, vector<8x2048xf32> -> vector<8x2048xf32>
    %28 = arith.addf %23, %27 : vector<8x2048xf32>
    %29 = vector.extract_strided_slice %4 {offsets = [0, 128], sizes = [4, 2048], strides = [1, 1]} : vector<4x2304xf32> to vector<4x2048xf32>
    %c1_24 = arith.constant 1 : index
    %c2_25 = arith.constant 2 : index
    %c0_26 = arith.constant 0 : index
    %c0_27 = arith.constant 0 : index
    %30 = vector.load %arg3[%c1_24, %c2_25, %c0_26, %c0_27] : memref<3x3x8x4xf32, #tpu.memory_space<vmem>>, vector<1x1x8x4xf32>
    %31 = vector.shape_cast %30 : vector<1x1x8x4xf32> to vector<8x4xf32>
    %cst_28 = arith.constant dense<0.000000e+00> : vector<8x2048xf32>
    %32 = tpu.matmul %31, %29, %cst_28 {dimension_numbers = #tpu.dot_dimension_numbers<[1], [0], [0], [1], [0, 0, 1, 1], [], []>} : vector<8x4xf32>, vector<4x2048xf32>, vector<8x2048xf32> -> vector<8x2048xf32>
    %33 = arith.addf %28, %32 : vector<8x2048xf32>
    %34 = vector.extract_strided_slice %2 {offsets = [0, 256], sizes = [4, 2048], strides = [1, 1]} : vector<4x2304xf32> to vector<4x2048xf32>
    %c2_29 = arith.constant 2 : index
    %c0_30 = arith.constant 0 : index
    %c0_31 = arith.constant 0 : index
    %c0_32 = arith.constant 0 : index
    %35 = vector.load %arg3[%c2_29, %c0_30, %c0_31, %c0_32] : memref<3x3x8x4xf32, #tpu.memory_space<vmem>>, vector<1x1x8x4xf32>
    %36 = vector.shape_cast %35 : vector<1x1x8x4xf32> to vector<8x4xf32>
    %cst_33 = arith.constant dense<0.000000e+00> : vector<8x2048xf32>
    %37 = tpu.matmul %36, %34, %cst_33 {dimension_numbers = #tpu.dot_dimension_numbers<[1], [0], [0], [1], [0, 0, 1, 1], [], []>} : vector<8x4xf32>, vector<4x2048xf32>, vector<8x2048xf32> -> vector<8x2048xf32>
    %38 = arith.addf %33, %37 : vector<8x2048xf32>
    %39 = vector.extract_strided_slice %3 {offsets = [0, 256], sizes = [4, 2048], strides = [1, 1]} : vector<4x2304xf32> to vector<4x2048xf32>
    %c2_34 = arith.constant 2 : index
    %c1_35 = arith.constant 1 : index
    %c0_36 = arith.constant 0 : index
    %c0_37 = arith.constant 0 : index
    %40 = vector.load %arg3[%c2_34, %c1_35, %c0_36, %c0_37] : memref<3x3x8x4xf32, #tpu.memory_space<vmem>>, vector<1x1x8x4xf32>
    %41 = vector.shape_cast %40 : vector<1x1x8x4xf32> to vector<8x4xf32>
    %cst_38 = arith.constant dense<0.000000e+00> : vector<8x2048xf32>
    %42 = tpu.matmul %41, %39, %cst_38 {dimension_numbers = #tpu.dot_dimension_numbers<[1], [0], [0], [1], [0, 0, 1, 1], [], []>} : vector<8x4xf32>, vector<4x2048xf32>, vector<8x2048xf32> -> vector<8x2048xf32>
    %43 = arith.addf %38, %42 : vector<8x2048xf32>
    %44 = vector.extract_strided_slice %4 {offsets = [0, 256], sizes = [4, 2048], strides = [1, 1]} : vector<4x2304xf32> to vector<4x2048xf32>
    %c2_39 = arith.constant 2 : index
    %c2_40 = arith.constant 2 : index
    %c0_41 = arith.constant 0 : index
    %c0_42 = arith.constant 0 : index
    %45 = vector.load %arg3[%c2_39, %c2_40, %c0_41, %c0_42] : memref<3x3x8x4xf32, #tpu.memory_space<vmem>>, vector<1x1x8x4xf32>
    %46 = vector.shape_cast %45 : vector<1x1x8x4xf32> to vector<8x4xf32>
    %cst_43 = arith.constant dense<0.000000e+00> : vector<8x2048xf32>
    %47 = tpu.matmul %46, %44, %cst_43 {dimension_numbers = #tpu.dot_dimension_numbers<[1], [0], [0], [1], [0, 0, 1, 1], [], []>} : vector<8x4xf32>, vector<4x2048xf32>, vector<8x2048xf32> -> vector<8x2048xf32>
    %48 = arith.addf %43, %47 : vector<8x2048xf32>
    %c0_44 = arith.constant 0 : index
    %c0_45 = arith.constant 0 : index
    %49 = vector.load %arg4[%c0_44, %c0_45] : memref<8x1xf32, #tpu.memory_space<vmem>>, vector<8x1xf32>
    %50 = vector.broadcast %49 : vector<8x1xf32> to vector<8x2048xf32>
    %51 = arith.addf %48, %50 : vector<8x2048xf32>
    %c0_46 = arith.constant 0 : index
    %c0_47 = arith.constant 0 : index
    %c0_48 = arith.constant 0 : index
    %52 = vector.load %arg5[%c0_46, %c0_47, %c0_48] : memref<1x8x2048xf32, #tpu.memory_space<vmem>>, vector<1x8x2048xf32>
    %53 = vector.shape_cast %52 : vector<1x8x2048xf32> to vector<8x2048xf32>
    %54 = vector.shape_cast %51 : vector<8x2048xf32> to vector<1x8x2048xf32>
    tpu.vector_store %arg5[%c0_46, %c0_47, %c0_48], %54 {strides = array<i32>} : memref<1x8x2048xf32, #tpu.memory_space<vmem>>, vector<1x8x2048xf32>,
    return
  }
  func.func @transform_0(%arg0: i32, %arg1: i32) -> (i32, i32, i32) {
    %c0_i32 = arith.constant 0 : i32
    %c0_i32_0 = arith.constant 0 : i32
    %c0_i32_1 = arith.constant 0 : i32
    return %arg0, %c0_i32, %c0_i32_0 : i32, i32, i32
  }
  func.func @transform_1(%arg0: i32, %arg1: i32) -> (i32, i32, i32, i32) {
    %c0_i32 = arith.constant 0 : i32
    %c0_i32_0 = arith.constant 0 : i32
    %c0_i32_1 = arith.constant 0 : i32
    %c0_i32_2 = arith.constant 0 : i32
    return %c0_i32, %c0_i32_0, %arg1, %c0_i32_1 : i32, i32, i32, i32
  }
  func.func @transform_2(%arg0: i32, %arg1: i32) -> (i32, i32) {
    %c0_i32 = arith.constant 0 : i32
    %c0_i32_0 = arith.constant 0 : i32
    return %arg1, %c0_i32 : i32, i32
  }
  func.func @transform_3(%arg0: i32, %arg1: i32) -> (i32, i32, i32) {
    %c0_i32 = arith.constant 0 : i32
    %c0_i32_0 = arith.constant 0 : i32
    return %arg0, %arg1, %c0_i32 : i32, i32, i32
  }
}

</mosaic_0001>

<bundles_post_ra>
// kernel: tpu_custom_call.1
= control target key start
LH: loop header
LB: loop body
LE: loop exit
PB: predicated region body
PF: predicated region fallthrough
CT: control target
= control target key end

     0   :  { %8 = vsyncpa [#allocation3], 0  ;;  %s7407_s0 = inlined_call_operand.hbm [shape: f32[2,4,2432], index: 0, kind: input, shape index: {}]   ;;  %s7408_s1 = inlined_call_operand.vmem [shape: f32[3,3,8,4], index: 1, kind: input, shape index: {}]   ;;  %s7409_s2 = inlined_call_operand.vmem [shape: f32[8,1], index: 2, kind: input, shape index: {}]   ;;  %s7410_s3 = inlined_call_operand.hbm [shape: f32[2,8,2048], index: 3, kind: output, shape index: {}]  }
   0x1   :  { %10 = vsyncpa [#allocation3 + $0x1], 0 }
   0x2   :  { %11 = vsyncpa [#allocation4], 0 }
   0x3   :  { %13 = vsyncpa [#allocation4 + $0x1], 0  ;;  %s6376_s12 = smov 0   ;;  %s6378_s13 = smov 0  }
   0x4   :  { %s6380_s14 = smov 0   ;;  %s6382_s15 = smov 0  }
   0x5   :  { %s6384_s16 = smov 0   ;;  %s6386_s17 = smov 0  }
   0x6 LB: > { %s5922_s18 = sadd.s32 4294967295, %s6348_s17   ;;  %s5923_s19 = sadd.s32 4294967294, %s6348_s17   ;;  %s6348_s17 = sphi %s6386_s17, %s19_s17   ;;  %s6344_s16 = sphi %s6384_s16, %s7458_s16   ;;  %s6340_s15 = sphi %s6382_s15, %s7457_s15   ;;  %s6336_s14 = sphi %s6380_s14, %s7456_s14   ;;  %s6332_s13 = sphi %s6378_s13, %s7455_s13   ;;  %s6328_s12 = sphi %s6376_s12, %s7454_s12  }
   0x7   : > { %s31_s20 = sadd.s32 1, %s6344_s16  ;;  %s38_s21 = sadd.s32 1, %s6336_s14 }
   0x8   : > { %p33_p0 = scmp.ge.s32.totalorder %s31_s20, 2  ;;  %p45_p1 = scmp.ne.s32.totalorder %s6336_s14, %s6332_s13 }
   0x9   : > { %p46_p2 = scmp.eq.s32.totalorder %s6348_s17, 0  ;;  %p51_p3 = scmp.ne.s32.totalorder %s6332_s13, %s6328_s12 }
   0xa   : > { %s7460_s20 = smov (%p33_p0, %s31_s20), 0  ;;  %p52_p5 = scmp.eq.s32.totalorder %s5922_s18, 0 }
   0xb   : > { %p6417_p4 = por %p46_p2, %p45_p1  ;;  %s35_s23 = ssub.s32 %s6344_s16, %s7460_s20 }
   0xc   : > { %p129_p6 = scmp.eq.s32.totalorder %s5922_s18, 1  ;;  %p36_p7 = scmp.eq.s32.totalorder %s35_s23, 0 }
   0xd   : > { %p6423_p8 = por %p52_p5, %p51_p3  ;;  %p135_p10 = scmp.eq.s32.totalorder %s5923_s19, 1 }
   0xe   : > { %p6427_p9 = por %p129_p6, %p45_p1  ;;  %p6176_p13 = scmp.lt.s32.totalorder %s6348_s17, 2 }
   0xf   : > { %s6432_s26 = scalar_select %p36_p7, %s6336_s14, %s38_s21  }
  0x10   : > { %p6434_p11 = por %p135_p10, %p51_p3  ;;  %s169_s28 = sand.u32 1, %s6336_s14  }
  0x11   : > { %s6161_s29 = smul.u32 76, %s169_s28  ;;  %p6444_p0 = pnand %p6176_p13, %p6417_p4 }
  0x12   : > { %s7414_s27 = scalar_select %p6434_p11, 1, 0 }
  0x13   : > { %s6162_s30 = smul.u32 1216, %s6344_s16  ;;  %p5929_p1 = scmp.ge.s32.totalorder %s6348_s17, 1 }
  0x14   : > { %s173_s8 = scalar_lea.vmem [#allocation2], %s6161_s29  ;;  %s170_s10 = scalar_lea.sflag [#allocation3], %s169_s28 }
  0x15   : > { %s179_s7 = scalar_lea.hbm %s7407_s0, %s6162_s30  ;;  %s181_s9 = sshll.u32 %s173_s8, 4  ;;  %s182_s9 = int_to_ptr.vmem [resolvable:$true] %s181_s9 }
  0x16   : > { %p6242_p2 = pneg %p6444_p0  ;;  %s6253_s11 = scalar_lea.vmem %s182_s9, 1216 }
  0x17   : > { %p6254_p3 = scmp.ne.s32.totalorder %s182_s9, %s6253_s11  ;;  %s6350_s18 = smov [#allocation2]  }
  0x18   : > { %s6258_s19 = sshll.u32 %s6350_s18, 4  ;;  %s6259_s19 = int_to_ptr.vmem [resolvable:$false] %s6258_s19 }
  0x19   : > { %p6256_p5 = pnand %p6254_p3, %p6242_p2  ;;  %s6260_s21 = scalar_lea.vmem %s6259_s19, 2432 }
  0x1a   : > { %p6261_p4 = scmp.lt.s32.totalorder %s182_s9, %s6259_s19  ;;  %p6262_p7 = scmp.lt.s32.totalorder %s6260_s21, %s6253_s11 }
  0x1b   : > { %p6257_p6 = pneg %p6256_p5 }
  0x1c   : > { %p6263_p10 = por %p6262_p7, %p6261_p4 }
  0x1e   : > { %p6264_p13 = pnand %p6263_p10, %p6257_p6 }
  0x20   : > { %6267 = shalt.err (!%p6264_p13)
}
  0x21   : > { %6171 = dma.hbm_to_vmem [thread:$0]  (!%p6444_p0), %s179_s7, 1216, %s182_s9, %s170_s10  }
  0x22   : > { %p186_p12 = scmp.lt.s32.totalorder %s6348_s17, 3 }
  0x24   : > { %p187_p11 = pnand %p5929_p1, %p186_p12 }
  0x26   : > { %190 = sbr.rel (%p187_p11) target bundleno = 540 (0x21c), region = 32 }
  0x2b   : > { %s6460_s22 = sand.u32 1, %s6332_s13  }
  0x2c   : > { %s6163_s23 = smul.u32 76, %s6460_s22  ;;  %s193_s28 = scalar_lea.sflag [#allocation3], %s6460_s22 }
  0x2e   : > { %s6464_s29 = scalar_lea.vmem [#allocation2], %s6163_s23 }
  0x2f   : > { %6319 = dma.done.wait (%p6423_p8), %s193_s28, 1216  }
  0x30   : > { %6321 = vsyncadd (%p6423_p8), %s193_s28, 4294966080  ;;  %v6471_v0 = vld [vmem:[%s6464_s29 + $0x10] sm:$0xff]  ;;  %v6474_v1 = vld [vmem:[%s6464_s29 + $0x8] sm:$0xff]  ;;  %s6351_s30 = smov 127   ;;  %v6352_v4 = vmov 0.0   ;;  %s6353_s24 = smov 126  }
  0x31   : > { %273 = vrot.lane.b32.xlu1 %v6471_v0, %s6351_s30  ;;  %269 = vrot.lane.b32.xlu0 %v6474_v1, %s6351_s30  ;;  %v6482_v2 = vcombine.high %v6474_v1, %v6474_v1  ;;  %v6485_v3 = vld [vmem:[%s6464_s29] sm:$0xff]  ;;  %v6495_v5 = vcombine.high %v6471_v0, %v6471_v0  ;;  %v6502_v7 = vld [vmem:[%s6464_s29 + $0x18] sm:$0xff]  ;;  %vm299_vm0 = vcmask 1039360   ;;  %vm320_vm1 = vcmask 1043456   ;;  %s5930_s8 = sshll.u32 %s6460_s22, 7  ;;  %s6160_s10 = sshll.u32 %s6340_s15, 11 }
  0x32   : > { %417 = vmatprep.mubr.f32.mxu0 %v6352_v4  ;;  %488 = vmatprep.mubr.f32.mxu1 %v6352_v4  ;;  %v6499_v6 = vcombine.high %v6485_v3, %v6485_v3  ;;  %v6510_v8 = vcombine.high %v6502_v7, %v6502_v7  ;;  %v6513_v9 = vld [vmem:[%s6464_s29 + $0x20] sm:$0xff]  ;;  %v6524_v11 = vld [vmem:[%s6464_s29 + $0x28] sm:$0xff]  ;;  %v6535_v13 = vld [vmem:[%s6464_s29 + $0x30] sm:$0xff]  ;;  %vm316_vm2 = vcmask 31744   ;;  %vm1560_vm3 = vcmask 1031168   ;;  %s7314_s9 = scalar_lea.vmem [#allocation5], %s5930_s8  ;;  %s5809_s21 = scalar_lea.hbm %s7410_s3, %s6160_s10 }
  0x33   : > { %v6521_v10 = vcombine.high %v6513_v9, %v6513_v9  ;;  %v6532_v12 = vcombine.high %v6524_v11, %v6524_v11  ;;  %v6543_v14 = vcombine.high %v6535_v13, %v6535_v13  ;;  %v6546_v15 = vld [vmem:[%s6464_s29 + $0x38] sm:$0xff]  ;;  %v6561_v17 = vld [vmem:[%s6464_s29 + $0x40] sm:$0xff]  ;;  %v244_v19 = vld [vmem:[%s6464_s29 + $0x48] sm:$0xf]  ;;  %s5811_s11 = sshll.u32 %s7314_s9, 4  ;;  %s5795_s23 = scalar_lea.sflag [#allocation4], %s6460_s22  ;;  %s5812_s11 = int_to_ptr.vmem [resolvable:$true] %s5811_s11 }
  0x34   : > { %v6554_v16 = vcombine.high %v6546_v15, %v6546_v15  ;;  %v6584_v18 = vcombine.high %v6561_v17, %v6561_v17  ;;  %v6604_v26 = vld [vmem:[%s7408_s1 + $0x8] sm:$0xff]  ;;  %v245_v54 = vld [vmem:[%s7408_s1] sm:$0xff]  ;;  %s6268_s28 = scalar_lea.vmem %s5812_s11, 2048  ;;  %s6355_s15 = smov [#allocation5]  }
  0x35   : > { %271 = vrot.lane.b32.xlu1 %v6482_v2, %s6351_s30  ;;  %265 = vrot.lane.b32.xlu0 %v6485_v3, %s6351_s30  ;;  %p6269_p8 = scmp.ne.s32.totalorder %s5812_s11, %s6268_s28  ;;  %s6272_s29 = sshll.u32 %s6355_s15, 4  ;;  %s6273_s29 = int_to_ptr.vmem [resolvable:$false] %s6272_s29 }
  0x36   : > { %p6275_p0 = scmp.lt.s32.totalorder %s5812_s11, %s6273_s29 }
  0x37   : > { %p6270_p11 = pnand %p6269_p8, %p6427_p9 }
  0x39   : > { %275 = vrot.lane.b32.xlu1 %v6495_v5, %s6351_s30  ;;  %267 = vrot.lane.b32.xlu0 %v6499_v6, %s6351_s30  ;;  %p6271_p12 = pneg %p6270_p11 }
  0x3d   : > { %279 = vrot.lane.b32.xlu1 %v6510_v8, %s6351_s30  ;;  %277 = vrot.lane.b32.xlu0 %v6502_v7, %s6351_s30 }
  0x41   : > { %283 = vrot.lane.b32.xlu1 %v6521_v10, %s6351_s30  ;;  %281 = vrot.lane.b32.xlu0 %v6513_v9, %s6351_s30 }
  0x45   : > { %287 = vrot.lane.b32.xlu1 %v6532_v12, %s6351_s30  ;;  %285 = vrot.lane.b32.xlu0 %v6524_v11, %s6351_s30 }
  0x49   : > { %291 = vrot.lane.b32.xlu1 %v6543_v14, %s6351_s30  ;;  %289 = vrot.lane.b32.xlu0 %v6535_v13, %s6351_s30 }
  0x4d   : > { %295 = vrot.lane.b32.xlu1 %v6554_v16, %s6351_s30  ;;  %293 = vrot.lane.b32.xlu0 %v6546_v15, %s6351_s30 }
  0x51   : > { %1528 = vrot.lane.b32.xlu1 %v6499_v6, %s6353_s24  ;;  %297 = vrot.lane.b32.xlu0 %v6561_v17, %s6351_s30 }
  0x55   : > { %1532 = vrot.lane.b32.xlu1 %v6482_v2, %s6353_s24  ;;  %1530 = vrot.lane.b32.xlu0 %v6474_v1, %s6353_s24 }
  0x59   : > { %1526 = vrot.lane.b32.xlu1 %v6485_v3, %s6353_s24  ;;  %1534 = vrot.lane.b32.xlu0 %v6471_v0, %s6353_s24 }
  0x5d   : > { %1538 = vrot.lane.b32.xlu1 %v6502_v7, %s6353_s24  ;;  %1536 = vrot.lane.b32.xlu0 %v6495_v5, %s6353_s24 }
  0x61   : > { %1542 = vrot.lane.b32.xlu1 %v6513_v9, %s6353_s24  ;;  %1540 = vrot.lane.b32.xlu0 %v6510_v8, %s6353_s24 }
  0x65   : > { %1546 = vrot.lane.b32.xlu1 %v6524_v11, %s6353_s24  ;;  %1544 = vrot.lane.b32.xlu0 %v6521_v10, %s6353_s24 }
  0x69   : > { %1550 = vrot.lane.b32.xlu1 %v6535_v13, %s6353_s24  ;;  %1548 = vrot.lane.b32.xlu0 %v6532_v12, %s6353_s24 }
  0x6d   : > { %1554 = vrot.lane.b32.xlu1 %v6546_v15, %s6353_s24  ;;  %1552 = vrot.lane.b32.xlu0 %v6543_v14, %s6353_s24 }
  0x71   : > { %1558 = vrot.lane.b32.xlu1 %v6561_v17, %s6353_s24  ;;  %1556 = vrot.lane.b32.xlu0 %v6554_v16, %s6353_s24 }
  0x75   : > { %3384 = vrot.lane.b32.xlu1 %v6584_v18, %s6353_s24  ;;  %2790 = vrot.lane.b32.xlu0 %v6584_v18, %s6351_s30 }
  0x79   : > { %4570 = vrot.lane.b32.xlu0 %v244_v19, %s6351_s30  ;;  %5164 = vrot.lane.b32.xlu1 %v244_v19, %s6353_s24  ;;  %s6274_s30 = scalar_lea.vmem %s6273_s29, 4096 }
  0x7a   : > { %p6276_p1 = scmp.lt.s32.totalorder %s6274_s30, %s6268_s28 }
  0x7c   : > { %p6277_p2 = por %p6276_p1, %p6275_p0 }
  0x7e   : > { %p6278_p3 = pnand %p6277_p2, %p6271_p12 }
  0xa3   : > { %v274_v20 = vpop.permute.xlu1 %273  ;;  %v270_v21 = vpop.permute.xlu0 %269 }
  0xa7   : > { %v272_v22 = vpop.permute.xlu1 %271  ;;  %v266_v23 = vpop.permute.xlu0 %265 }
  0xa8   : > { %v6592_v24 = vsel %vm299_vm0, %v272_v22, %v274_v20  ;;  %v6595_v25 = vsel %vm299_vm0, %v270_v21, %v272_v22  ;;  %v5980_v22 = vld [vmem:[%s7408_s1 + $0x10] sm:$0xff] }
  0xa9   : > { %5935 = vmatprep.subr.msk.mxu1 %vm320_vm1, %v6592_v24 }
  0xaa   : > { %5936 = vmatpush1.msk.msra.mxu1 %vm320_vm1, %v6595_v25 }
  0xab   : > { %v276_v27 = vpop.permute.xlu1 %275  ;;  %v268_v28 = vpop.permute.xlu0 %267  ;;  %5937 = vmatmul.mubr.msk.f32.vlgmr.msra.gmra.mxu1 %vm316_vm2, %v6604_v26 }
  0xac   : > { %v6609_v29 = vsel %vm299_vm0, %v268_v28, %v270_v21  ;;  %v300_v30 = vsel %vm299_vm0, %v266_v23, %v268_v28  ;;  %630 = vmatprep.mubr.f32.mxu1 %v6352_v4  ;;  %v6623_v34 = vsel %vm299_vm0, %v274_v20, %v276_v27 }
  0xad   : > { %5932 = vmatprep.subr.msk.mxu0 %vm320_vm1, %v6609_v29 }
  0xae   : > { %5933 = vmatpush1.msk.msra.mxu0 %vm320_vm1, %v300_v30 }
  0xaf   : > { %v280_v31 = vpop.permute.xlu1 %279  ;;  %v278_v32 = vpop.permute.xlu0 %277  ;;  %5934 = vmatmul.mubr.msk.f32.vlgmr.msra.gmra.mxu0 %vm316_vm2, %v6604_v26 }
  0xb0   : > { %v6619_v33 = vsel %vm299_vm0, %v276_v27, %v278_v32  ;;  %559 = vmatprep.mubr.f32.mxu0 %v6352_v4  ;;  %v6636_v38 = vsel %vm299_vm0, %v278_v32, %v280_v31 }
  0xb1   : > { %5938 = vmatprep.subr.msk.mxu0 %vm320_vm1, %v6619_v33 }
  0xb2   : > { %5939 = vmatpush1.msk.msra.mxu0 %vm320_vm1, %v6623_v34 }
  0xb3   : > { %v284_v35 = vpop.permute.xlu1 %283  ;;  %v282_v36 = vpop.permute.xlu0 %281  ;;  %5940 = vmatmul.mubr.msk.f32.vlgmr.msra.gmra.mxu0 %vm316_vm2, %v6604_v26 }
  0xb4   : > { %v6632_v37 = vsel %vm299_vm0, %v280_v31, %v282_v36  ;;  %701 = vmatprep.mubr.f32.mxu0 %v6352_v4  ;;  %v6649_v42 = vsel %vm299_vm0, %v282_v36, %v284_v35 }
  0xb5   : > { %5941 = vmatprep.subr.msk.mxu1 %vm320_vm1, %v6632_v37 }
  0xb6   : > { %5942 = vmatpush1.msk.msra.mxu1 %vm320_vm1, %v6636_v38 }
  0xb7   : > { %v288_v39 = vpop.permute.xlu1 %287  ;;  %v286_v40 = vpop.permute.xlu0 %285  ;;  %5943 = vmatmul.mubr.msk.f32.vlgmr.msra.gmra.mxu1 %vm316_vm2, %v6604_v26 }
  0xb8   : > { %v6645_v41 = vsel %vm299_vm0, %v284_v35, %v286_v40  ;;  %772 = vmatprep.mubr.f32.mxu1 %v6352_v4  ;;  %v6662_v46 = vsel %vm299_vm0, %v286_v40, %v288_v39 }
  0xb9   : > { %5944 = vmatprep.subr.msk.mxu0 %vm320_vm1, %v6645_v41 }
  0xba   : > { %5945 = vmatpush1.msk.msra.mxu0 %vm320_vm1, %v6649_v42 }
  0xbb   : > { %v292_v43 = vpop.permute.xlu1 %291  ;;  %v290_v44 = vpop.permute.xlu0 %289  ;;  %5946 = vmatmul.mubr.msk.f32.vlgmr.msra.gmra.mxu0 %vm316_vm2, %v6604_v26 }
  0xbc   : > { %v6658_v45 = vsel %vm299_vm0, %v288_v39, %v290_v44  ;;  %843 = vmatprep.mubr.f32.mxu0 %v6352_v4  ;;  %v6675_v50 = vsel %vm299_vm0, %v290_v44, %v292_v43 }
  0xbd   : > { %5947 = vmatprep.subr.msk.mxu1 %vm320_vm1, %v6658_v45 }
  0xbe   : > { %5948 = vmatpush1.msk.msra.mxu1 %vm320_vm1, %v6662_v46 }
  0xbf   : > { %v296_v47 = vpop.permute.xlu1 %295  ;;  %v294_v48 = vpop.permute.xlu0 %293  ;;  %5949 = vmatmul.mubr.msk.f32.vlgmr.msra.gmra.mxu1 %vm316_vm2, %v6604_v26 }
  0xc0   : > { %v6671_v49 = vsel %vm299_vm0, %v292_v43, %v294_v48  ;;  %914 = vmatprep.mubr.f32.mxu1 %v6352_v4  ;;  %v6698_v55 = vsel %vm299_vm0, %v294_v48, %v296_v47 }
  0xc1   : > { %5950 = vmatprep.subr.msk.mxu0 %vm320_vm1, %v6671_v49 }
  0xc2   : > { %5951 = vmatpush1.msk.msra.mxu0 %vm320_vm1, %v6675_v50 }
  0xc3   : > { %v1529_v51 = vpop.permute.xlu1 %1528  ;;  %5952 = vmatmul.mubr.msk.f32.vlgmr.msra.gmra.mxu0 %vm316_vm2, %v6604_v26  ;;  %v6683_v52 = vpop.permute.xlu0 %297  ;;  %5956 = vmatprep.subr.msk.mxu0 %vm320_vm1, %v6499_v6 }
  0xc4   : > { %v6689_v53 = vsel %vm299_vm0, %v296_v47, %v6683_v52  ;;  %5957 = vmatpush1.msk.msra.mxu0 %vm320_vm1, %v6485_v3  ;;  %1020 = vmatprep.mubr.f32.mxu0 %v6352_v4 }
  0xc5   : > { %5953 = vmatprep.subr.msk.mxu1 %vm320_vm1, %v6689_v53  ;;  %5962 = vmatprep.subr.msk.mxu0 %vm320_vm1, %v6495_v5 }
  0xc6   : > { %5954 = vmatpush1.msk.msra.mxu1 %vm320_vm1, %v6698_v55 }
  0xc7   : > { %v1533_v56 = vpop.permute.xlu1 %1532  ;;  %5955 = vmatmul.mubr.msk.f32.vlgmr.msra.gmra.mxu1 %vm316_vm2, %v6604_v26  ;;  %5958 = vmatmul.mubr.msk.f32.vlgmr.msra.gmra.mxu0 %vm316_vm2, %v245_v54  ;;  %v1531_v57 = vpop.permute.xlu0 %1530 }
  0xc8   : > { %5959 = vmatprep.subr.msk.mxu1 %vm320_vm1, %v6482_v2  ;;  %1091 = vmatprep.mubr.f32.mxu1 %v6352_v4  ;;  %v6734_v62 = vsel %vm1560_vm3, %v1529_v51, %v1531_v57  ;;  %v6769_v23 = vsel %vm1560_vm3, %v1531_v57, %v1533_v56 }
  0xc9   : > { %5960 = vmatpush1.msk.msra.mxu1 %vm320_vm1, %v6474_v1  ;;  %5963 = vmatpush1.msk.msra.mxu0 %vm320_vm1, %v6471_v0 }
  0xca   : > { %1162 = vmatprep.mubr.f32.mxu0 %v6352_v4  ;;  %5968 = vmatprep.subr.msk.mxu0 %vm320_vm1, %v6521_v10 }
  0xcb   : > { %v1527_v58 = vpop.permute.xlu1 %1526  ;;  %5961 = vmatmul.mubr.msk.f32.vlgmr.msra.gmra.mxu1 %vm316_vm2, %v245_v54  ;;  %5964 = vmatmul.mubr.msk.f32.vlgmr.msra.gmra.mxu0 %vm316_vm2, %v245_v54  ;;  %v1535_v59 = vpop.permute.xlu0 %1534 }
  0xcc   : > { %5965 = vmatprep.subr.msk.mxu1 %vm320_vm1, %v6510_v8  ;;  %5969 = vmatpush1.msk.msra.mxu0 %vm320_vm1, %v6513_v9  ;;  %v1561_v19 = vsel %vm1560_vm3, %v1527_v58, %v1529_v51  ;;  %v6751_v20 = vsel %vm1560_vm3, %v1533_v56, %v1535_v59 }
  0xcd   : > { %5966 = vmatpush1.msk.msra.mxu1 %vm320_vm1, %v6502_v7  ;;  %1233 = vmatprep.mubr.f32.mxu1 %v6352_v4 }
  0xce   : > { %1304 = vmatprep.mubr.f32.mxu0 %v6352_v4  ;;  %5974 = vmatprep.subr.msk.mxu0 %vm320_vm1, %v6543_v14 }
  0xcf   : > { %v1539_v60 = vpop.permute.xlu1 %1538  ;;  %5967 = vmatmul.mubr.msk.f32.vlgmr.msra.gmra.mxu1 %vm316_vm2, %v245_v54  ;;  %5970 = vmatmul.mubr.msk.f32.vlgmr.msra.gmra.mxu0 %vm316_vm2, %v245_v54  ;;  %v1537_v61 = vpop.permute.xlu0 %1536 }
  0xd0   : > { %5975 = vmatpush1.msk.msra.mxu0 %vm320_vm1, %v6535_v13  ;;  %5971 = vmatprep.subr.msk.mxu1 %vm320_vm1, %v6532_v12  ;;  %v6757_v21 = vsel %vm1560_vm3, %v1537_v61, %v1539_v60  ;;  %v6774_v28 = vsel %vm1560_vm3, %v1535_v59, %v1537_v61  ;;  %v6005_v59 = vld [vmem:[%s7408_s1 + $0x18] sm:$0xff] }
  0xd1   : > { %5981 = vmatprep.subr.msk.mxu0 %vm320_vm1, %v6734_v62  ;;  %5972 = vmatpush1.msk.msra.mxu1 %vm320_vm1, %v6524_v11 }
  0xd2   : > { %1375 = vmatprep.mubr.f32.mxu1 %v6352_v4  ;;  %1446 = vmatprep.mubr.f32.mxu0 %v6352_v4 }
  0xd3   : > { %5977 = vmatprep.subr.msk.mxu1 %vm320_vm1, %v6554_v16  ;;  %v1543_v63 = vpop.permute.xlu1 %1542  ;;  %5973 = vmatmul.mubr.msk.f32.vlgmr.msra.gmra.mxu1 %vm316_vm2, %v245_v54  ;;  %v1541_v3 = vpop.permute.xlu0 %1540 }
  0xd4   : > { %5976 = vmatmul.mubr.msk.f32.vlgmr.msra.gmra.mxu0 %vm316_vm2, %v245_v54  ;;  %5978 = vmatpush1.msk.msra.mxu1 %vm320_vm1, %v6546_v15  ;;  %v6777_v30 = vsel %vm1560_vm3, %v1541_v3, %v1543_v63  ;;  %v6793_v32 = vsel %vm1560_vm3, %v1539_v60, %v1541_v3 }
  0xd5   : > { %5982 = vmatpush1.msk.msra.mxu0 %vm320_vm1, %v1561_v19  ;;  %5984 = vmatprep.subr.msk.mxu1 %vm320_vm1, %v6751_v20 }
  0xd6   : > { %5987 = vmatprep.subr.msk.mxu0 %vm320_vm1, %v6757_v21  ;;  %1517 = vmatprep.mubr.f32.mxu1 %v6352_v4 }
  0xd7   : > { %1676 = vmatprep.mubr.f32.mxu0 %v6352_v4  ;;  %v1547_v26 = vpop.permute.xlu1 %1546  ;;  %5979 = vmatmul.mubr.msk.f32.vlgmr.msra.gmra.mxu1 %vm316_vm2, %v245_v54  ;;  %v1545_v27 = vpop.permute.xlu0 %1544 }
  0xd8   : > { %5983 = vmatmul.mubr.msk.f32.vlgmr.msra.gmra.mxu0 %vm316_vm2, %v5980_v22  ;;  %5985 = vmatpush1.msk.msra.mxu1 %vm320_vm1, %v6769_v23  ;;  %v6783_v31 = vsel %vm1560_vm3, %v1545_v27, %v1547_v26  ;;  %v6798_v39 = vsel %vm1560_vm3, %v1543_v63, %v1545_v27  ;;  %v6080_v63 = vld [vmem:[%s7408_s1 + $0x30] sm:$0xff] }
  0xd9   : > { %5988 = vmatpush1.msk.msra.mxu0 %vm320_vm1, %v6774_v28  ;;  %5990 = vmatprep.subr.msk.mxu1 %vm320_vm1, %v6777_v30 }
  0xda   : > { %5993 = vmatprep.subr.msk.mxu0 %vm320_vm1, %v6783_v31  ;;  %1747 = vmatprep.mubr.f32.mxu1 %v6352_v4 }
  0xdb   : > { %1818 = vmatprep.mubr.f32.mxu0 %v6352_v4  ;;  %v1551_v35 = vpop.permute.xlu1 %1550  ;;  %5986 = vmatmul.mubr.msk.f32.vlgmr.msra.gmra.mxu1 %vm316_vm2, %v5980_v22  ;;  %v1549_v36 = vpop.permute.xlu0 %1548 }
  0xdc   : > { %5989 = vmatmul.mubr.msk.f32.vlgmr.msra.gmra.mxu0 %vm316_vm2, %v5980_v22  ;;  %5991 = vmatpush1.msk.msra.mxu1 %vm320_vm1, %v6793_v32  ;;  %v6804_v40 = vsel %vm1560_vm3, %v1549_v36, %v1551_v35  ;;  %v6813_v43 = vsel %vm1560_vm3, %v1547_v26, %v1549_v36 }
  0xdd   : > { %5994 = vmatpush1.msk.msra.mxu0 %vm320_vm1, %v6798_v39  ;;  %5996 = vmatprep.subr.msk.mxu1 %vm320_vm1, %v6804_v40 }
  0xde   : > { %1889 = vmatprep.mubr.f32.mxu1 %v6352_v4  ;;  %1960 = vmatprep.mubr.f32.mxu0 %v6352_v4 }
  0xdf   : > { %v1555_v44 = vpop.permute.xlu1 %1554  ;;  %5992 = vmatmul.mubr.msk.f32.vlgmr.msra.gmra.mxu1 %vm316_vm2, %v5980_v22  ;;  %v1553_v47 = vpop.permute.xlu0 %1552 }
  0xe0   : > { %5995 = vmatmul.mubr.msk.f32.vlgmr.msra.gmra.mxu0 %vm316_vm2, %v5980_v22  ;;  %5997 = vmatpush1.msk.msra.mxu1 %vm320_vm1, %v6813_v43  ;;  %v6820_v48 = vsel %vm1560_vm3, %v1551_v35, %v1553_v47  ;;  %v6823_v51 = vsel %vm1560_vm3, %v1553_v47, %v1555_v44 }
  0xe1   : > { %5999 = vmatprep.subr.msk.mxu0 %vm320_vm1, %v6823_v51  ;;  %2031 = vmatprep.mubr.f32.mxu1 %v6352_v4 }
  0xe2   : > { %6000 = vmatpush1.msk.msra.mxu0 %vm320_vm1, %v6820_v48  ;;  %2102 = vmatprep.mubr.f32.mxu0 %v6352_v4 }
  0xe3   : > { %v6831_v54 = vpop.permute.xlu1 %1558  ;;  %5998 = vmatmul.mubr.msk.f32.vlgmr.msra.gmra.mxu1 %vm316_vm2, %v5980_v22  ;;  %v1557_v56 = vpop.permute.xlu0 %1556  ;;  %6006 = vmatprep.subr.msk.mxu0 %vm320_vm1, %v6474_v1 }
  0xe4   : > { %6001 = vmatmul.mubr.msk.f32.vlgmr.msra.gmra.mxu0 %vm316_vm2, %v5980_v22  ;;  %v6838_v57 = vsel %vm1560_vm3, %v1555_v44, %v1557_v56  ;;  %v6842_v58 = vsel %vm1560_vm3, %v1557_v56, %v6831_v54  ;;  %2173 = vmatprep.mubr.f32.mxu1 %v6352_v4 }
  0xe5   : > { %6002 = vmatprep.subr.msk.mxu1 %vm320_vm1, %v6842_v58  ;;  %6007 = vmatpush1.msk.msra.mxu0 %vm320_vm1, %v6499_v6  ;;  %v6030_v6 = vld [vmem:[%s7408_s1 + $0x20] sm:$0xff] }
  0xe6   : > { %6003 = vmatpush1.msk.msra.mxu1 %vm320_vm1, %v6838_v57  ;;  %2267 = vmatprep.mubr.f32.mxu0 %v6352_v4 }
  0xe7   : > { %6004 = vmatmul.mubr.msk.f32.vlgmr.msra.gmra.mxu1 %vm316_vm2, %v5980_v22  ;;  %6009 = vmatprep.subr.msk.mxu1 %vm320_vm1, %v6471_v0  ;;  %v6986_v61 = vpop.permute.xlu1 %3384 }
  0xe8   : > { %6008 = vmatmul.mubr.msk.f32.vlgmr.msra.gmra.mxu0 %vm316_vm2, %v6005_v59  ;;  %6012 = vmatprep.subr.msk.mxu0 %vm320_vm1, %v6502_v7 }
  0xe9   : > { %6010 = vmatpush1.msk.msra.mxu1 %vm320_vm1, %v6482_v2  ;;  %2338 = vmatprep.mubr.f32.mxu1 %v6352_v4 }
  0xea   : > { %6013 = vmatpush1.msk.msra.mxu0 %vm320_vm1, %v6495_v5  ;;  %2409 = vmatprep.mubr.f32.mxu0 %v6352_v4 }
  0xeb   : > { %6011 = vmatmul.mubr.msk.f32.vlgmr.msra.gmra.mxu1 %vm316_vm2, %v6005_v59  ;;  %6018 = vmatprep.subr.msk.mxu0 %vm320_vm1, %v6524_v11 }
  0xec   : > { %6014 = vmatmul.mubr.msk.f32.vlgmr.msra.gmra.mxu0 %vm316_vm2, %v6005_v59  ;;  %6015 = vmatprep.subr.msk.mxu1 %vm320_vm1, %v6513_v9 }
  0xed   : > { %6019 = vmatpush1.msk.msra.mxu0 %vm320_vm1, %v6521_v10  ;;  %6016 = vmatpush1.msk.msra.mxu1 %vm320_vm1, %v6510_v8 }
  0xee   : > { %2480 = vmatprep.mubr.f32.mxu1 %v6352_v4  ;;  %2551 = vmatprep.mubr.f32.mxu0 %v6352_v4 }
  0xef   : > { %6024 = vmatprep.subr.msk.mxu0 %vm320_vm1, %v6546_v15  ;;  %6017 = vmatmul.mubr.msk.f32.vlgmr.msra.gmra.mxu1 %vm316_vm2, %v6005_v59 }
  0xf0   : > { %6020 = vmatmul.mubr.msk.f32.vlgmr.msra.gmra.mxu0 %vm316_vm2, %v6005_v59  ;;  %6021 = vmatprep.subr.msk.mxu1 %vm320_vm1, %v6535_v13 }
  0xf1   : > { %6025 = vmatpush1.msk.msra.mxu0 %vm320_vm1, %v6543_v14  ;;  %6022 = vmatpush1.msk.msra.mxu1 %vm320_vm1, %v6532_v12 }
  0xf2   : > { %6031 = vmatprep.subr.msk.mxu0 %vm320_vm1, %v6595_v25  ;;  %2622 = vmatprep.mubr.f32.mxu1 %v6352_v4 }
  0xf3   : > { %2693 = vmatprep.mubr.f32.mxu0 %v6352_v4  ;;  %6027 = vmatprep.subr.msk.mxu1 %vm320_vm1, %v6561_v17 }
  0xf4   : > { %6023 = vmatmul.mubr.msk.f32.vlgmr.msra.gmra.mxu1 %vm316_vm2, %v6005_v59  ;;  %6026 = vmatmul.mubr.msk.f32.vlgmr.msra.gmra.mxu0 %vm316_vm2, %v6005_v59 }
  0xf5   : > { %6028 = vmatpush1.msk.msra.mxu1 %vm320_vm1, %v6554_v16  ;;  %6032 = vmatpush1.msk.msra.mxu0 %vm320_vm1, %v6609_v29  ;;  %v6928_v29 = vpop.permute.xlu0 %2790 }
  0xf6   : > { %6034 = vmatprep.subr.msk.mxu1 %vm320_vm1, %v6623_v34  ;;  %6037 = vmatprep.subr.msk.mxu0 %vm320_vm1, %v6636_v38  ;;  %v6941_v60 = vsel %vm299_vm0, %v6683_v52, %v6928_v29  ;;  %v6055_v52 = vld [vmem:[%s7408_s1 + $0x28] sm:$0xff] }
  0xf7   : > { %2764 = vmatprep.mubr.f32.mxu1 %v6352_v4  ;;  %2862 = vmatprep.mubr.f32.mxu0 %v6352_v4 }
  0xf8   : > { %6029 = vmatmul.mubr.msk.f32.vlgmr.msra.gmra.mxu1 %vm316_vm2, %v6005_v59  ;;  %6033 = vmatmul.mubr.msk.f32.vlgmr.msra.gmra.mxu0 %vm316_vm2, %v6030_v6 }
  0xf9   : > { %6035 = vmatpush1.msk.msra.mxu1 %vm320_vm1, %v6592_v24  ;;  %6038 = vmatpush1.msk.msra.mxu0 %vm320_vm1, %v6619_v33 }
  0xfa   : > { %6040 = vmatprep.subr.msk.mxu1 %vm320_vm1, %v6649_v42  ;;  %6043 = vmatprep.subr.msk.mxu0 %vm320_vm1, %v6662_v46 }
  0xfb   : > { %2933 = vmatprep.mubr.f32.mxu1 %v6352_v4  ;;  %3004 = vmatprep.mubr.f32.mxu0 %v6352_v4 }
  0xfc   : > { %6036 = vmatmul.mubr.msk.f32.vlgmr.msra.gmra.mxu1 %vm316_vm2, %v6030_v6  ;;  %6039 = vmatmul.mubr.msk.f32.vlgmr.msra.gmra.mxu0 %vm316_vm2, %v6030_v6 }
  0xfd   : > { %6041 = vmatpush1.msk.msra.mxu1 %vm320_vm1, %v6632_v37  ;;  %6044 = vmatpush1.msk.msra.mxu0 %vm320_vm1, %v6645_v41 }
  0xfe   : > { %6046 = vmatprep.subr.msk.mxu1 %vm320_vm1, %v6675_v50  ;;  %6049 = vmatprep.subr.msk.mxu0 %vm320_vm1, %v6698_v55 }
  0xff   : > { %3075 = vmatprep.mubr.f32.mxu1 %v6352_v4  ;;  %3146 = vmatprep.mubr.f32.mxu0 %v6352_v4 }
 0x100   : > { %6042 = vmatmul.mubr.msk.f32.vlgmr.msra.gmra.mxu1 %vm316_vm2, %v6030_v6  ;;  %6045 = vmatmul.mubr.msk.f32.vlgmr.msra.gmra.mxu0 %vm316_vm2, %v6030_v6 }
 0x101   : > { %6047 = vmatpush1.msk.msra.mxu1 %vm320_vm1, %v6658_v45  ;;  %6050 = vmatpush1.msk.msra.mxu0 %vm320_vm1, %v6671_v49 }
 0x102   : > { %6052 = vmatprep.subr.msk.mxu1 %vm320_vm1, %v6941_v60  ;;  %6056 = vmatprep.subr.msk.mxu0 %vm320_vm1, %v6769_v23 }
 0x103   : > { %3217 = vmatprep.mubr.f32.mxu1 %v6352_v4  ;;  %3288 = vmatprep.mubr.f32.mxu0 %v6352_v4 }
 0x104   : > { %6048 = vmatmul.mubr.msk.f32.vlgmr.msra.gmra.mxu1 %vm316_vm2, %v6030_v6  ;;  %6051 = vmatmul.mubr.msk.f32.vlgmr.msra.gmra.mxu0 %vm316_vm2, %v6030_v6 }
 0x105   : > { %6053 = vmatpush1.msk.msra.mxu1 %vm320_vm1, %v6689_v53  ;;  %6057 = vmatpush1.msk.msra.mxu0 %vm320_vm1, %v6734_v62  ;;  %v6999_v62 = vsel %vm1560_vm3, %v6831_v54, %v6986_v61 }
 0x106   : > { %6059 = vmatprep.subr.msk.mxu1 %vm320_vm1, %v6774_v28  ;;  %6062 = vmatprep.subr.msk.mxu0 %vm320_vm1, %v6793_v32 }
 0x107   : > { %3359 = vmatprep.mubr.f32.mxu1 %v6352_v4  ;;  %3456 = vmatprep.mubr.f32.mxu0 %v6352_v4 }
 0x108   : > { %6054 = vmatmul.mubr.msk.f32.vlgmr.msra.gmra.mxu1 %vm316_vm2, %v6030_v6  ;;  %6058 = vmatmul.mubr.msk.f32.vlgmr.msra.gmra.mxu0 %vm316_vm2, %v6055_v52 }
 0x109   : > { %6060 = vmatpush1.msk.msra.mxu1 %vm320_vm1, %v6751_v20  ;;  %6063 = vmatpush1.msk.msra.mxu0 %vm320_vm1, %v6757_v21 }
 0x10a   : > { %6065 = vmatprep.subr.msk.mxu1 %vm320_vm1, %v6798_v39  ;;  %6068 = vmatprep.subr.msk.mxu0 %vm320_vm1, %v6813_v43 }
 0x10b   : > { %3527 = vmatprep.mubr.f32.mxu1 %v6352_v4  ;;  %3598 = vmatprep.mubr.f32.mxu0 %v6352_v4 }
 0x10c   : > { %6061 = vmatmul.mubr.msk.f32.vlgmr.msra.gmra.mxu1 %vm316_vm2, %v6055_v52  ;;  %6064 = vmatmul.mubr.msk.f32.vlgmr.msra.gmra.mxu0 %vm316_vm2, %v6055_v52 }
 0x10d   : > { %6066 = vmatpush1.msk.msra.mxu1 %vm320_vm1, %v6777_v30  ;;  %6069 = vmatpush1.msk.msra.mxu0 %vm320_vm1, %v6783_v31 }
 0x10e   : > { %6071 = vmatprep.subr.msk.mxu1 %vm320_vm1, %v6820_v48  ;;  %6074 = vmatprep.subr.msk.mxu0 %vm320_vm1, %v6838_v57 }
 0x10f   : > { %3669 = vmatprep.mubr.f32.mxu1 %v6352_v4  ;;  %3740 = vmatprep.mubr.f32.mxu0 %v6352_v4 }
 0x110   : > { %6067 = vmatmul.mubr.msk.f32.vlgmr.msra.gmra.mxu1 %vm316_vm2, %v6055_v52  ;;  %6070 = vmatmul.mubr.msk.f32.vlgmr.msra.gmra.mxu0 %vm316_vm2, %v6055_v52 }
 0x111   : > { %6072 = vmatpush1.msk.msra.mxu1 %vm320_vm1, %v6804_v40  ;;  %6075 = vmatpush1.msk.msra.mxu0 %vm320_vm1, %v6823_v51 }
 0x112   : > { %6077 = vmatprep.subr.msk.mxu1 %vm320_vm1, %v6999_v62  ;;  %3811 = vmatprep.mubr.f32.mxu1 %v6352_v4 }
 0x113   : > { %3882 = vmatprep.mubr.f32.mxu0 %v6352_v4  ;;  %6081 = vmatprep.subr.msk.mxu0 %vm320_vm1, %v6482_v2 }
 0x114   : > { %6073 = vmatmul.mubr.msk.f32.vlgmr.msra.gmra.mxu1 %vm316_vm2, %v6055_v52  ;;  %6076 = vmatmul.mubr.msk.f32.vlgmr.msra.gmra.mxu0 %vm316_vm2, %v6055_v52 }
 0x115   : > { %6078 = vmatpush1.msk.msra.mxu1 %vm320_vm1, %v6842_v58  ;;  %3953 = vmatprep.mubr.f32.mxu1 %v6352_v4 }
 0x116   : > { %6082 = vmatpush1.msk.msra.mxu0 %vm320_vm1, %v6474_v1  ;;  %4047 = vmatprep.mubr.f32.mxu0 %v6352_v4  ;;  %v4571_v1 = vpop.permute.xlu0 %4570 }
 0x117   : > { %6084 = vmatprep.subr.msk.mxu1 %vm320_vm1, %v6495_v5  ;;  %6087 = vmatprep.subr.msk.mxu0 %vm320_vm1, %v6510_v8  ;;  %v4572_v2 = vsel %vm299_vm0, %v6928_v29, %v4571_v1  ;;  %v6130_v5 = vld [vmem:[%s7408_s1 + $0x40] sm:$0xff] }
 0x118   : > { %6079 = vmatmul.mubr.msk.f32.vlgmr.msra.gmra.mxu1 %vm316_vm2, %v6055_v52  ;;  %6083 = vmatmul.mubr.msk.f32.vlgmr.msra.gmra.mxu0 %vm316_vm2, %v6080_v63 }
 0x119   : > { %6085 = vmatpush1.msk.msra.mxu1 %vm320_vm1, %v6471_v0  ;;  %4118 = vmatprep.mubr.f32.mxu1 %v6352_v4  ;;  %v6105_v0 = vld [vmem:[%s7408_s1 + $0x38] sm:$0xff] }
 0x11a   : > { %6088 = vmatpush1.msk.msra.mxu0 %vm320_vm1, %v6502_v7  ;;  %4189 = vmatprep.mubr.f32.mxu0 %v6352_v4  ;;  %v5165_v7 = vpop.permute.xlu1 %5164 }
 0x11b   : > { %6093 = vmatprep.subr.msk.mxu0 %vm320_vm1, %v6532_v12  ;;  %6090 = vmatprep.subr.msk.mxu1 %vm320_vm1, %v6521_v10  ;;  %v5166_v8 = vsel %vm1560_vm3, %v6986_v61, %v5165_v7  ;;  %v5756_v10 = vld [vmem:[%s7409_s2] sm:$0xff] }
 0x11c   : > { %6086 = vmatmul.mubr.msk.f32.vlgmr.msra.gmra.mxu1 %vm316_vm2, %v6080_v63  ;;  %6089 = vmatmul.mubr.msk.f32.vlgmr.msra.gmra.mxu0 %vm316_vm2, %v6080_v63 }
 0x11d   : > { %6094 = vmatpush1.msk.msra.mxu0 %vm320_vm1, %v6524_v11  ;;  %6091 = vmatpush1.msk.msra.mxu1 %vm320_vm1, %v6513_v9  ;;  %v6354_v9 = vmov 0  }
 0x11e   : > { %4260 = vmatprep.mubr.f32.mxu1 %v6352_v4  ;;  %4331 = vmatprep.mubr.f32.mxu0 %v6352_v4 }
 0x11f   : > { %6099 = vmatprep.subr.msk.mxu0 %vm320_vm1, %v6554_v16  ;;  %6096 = vmatprep.subr.msk.mxu1 %vm320_vm1, %v6543_v14 }
 0x120   : > { %6092 = vmatmul.mubr.msk.f32.vlgmr.msra.gmra.mxu1 %vm316_vm2, %v6080_v63  ;;  %6095 = vmatmul.mubr.msk.f32.vlgmr.msra.gmra.mxu0 %vm316_vm2, %v6080_v63 }
 0x121   : > { %6100 = vmatpush1.msk.msra.mxu0 %vm320_vm1, %v6546_v15  ;;  %6097 = vmatpush1.msk.msra.mxu1 %vm320_vm1, %v6535_v13 }
 0x122   : > { %6106 = vmatprep.subr.msk.mxu0 %vm320_vm1, %v6592_v24  ;;  %4402 = vmatprep.mubr.f32.mxu1 %v6352_v4 }
 0x123   : > { %4473 = vmatprep.mubr.f32.mxu0 %v6352_v4  ;;  %6102 = vmatprep.subr.msk.mxu1 %vm320_vm1, %v6584_v18 }
 0x124   : > { %6098 = vmatmul.mubr.msk.f32.vlgmr.msra.gmra.mxu1 %vm316_vm2, %v6080_v63  ;;  %6101 = vmatmul.mubr.msk.f32.vlgmr.msra.gmra.mxu0 %vm316_vm2, %v6080_v63 }
 0x125   : > { %6103 = vmatpush1.msk.msra.mxu1 %vm320_vm1, %v6561_v17  ;;  %6107 = vmatpush1.msk.msra.mxu0 %vm320_vm1, %v6595_v25 }
 0x126   : > { %6109 = vmatprep.subr.msk.mxu1 %vm320_vm1, %v6619_v33  ;;  %6112 = vmatprep.subr.msk.mxu0 %vm320_vm1, %v6632_v37 }
 0x127   : > { %4544 = vmatprep.mubr.f32.mxu1 %v6352_v4  ;;  %4642 = vmatprep.mubr.f32.mxu0 %v6352_v4 }
 0x128   : > { %6104 = vmatmul.mubr.msk.f32.vlgmr.msra.gmra.mxu1 %vm316_vm2, %v6080_v63  ;;  %6108 = vmatmul.mubr.msk.f32.vlgmr.msra.gmra.mxu0 %vm316_vm2, %v6105_v0 }
 0x129   : > { %6110 = vmatpush1.msk.msra.mxu1 %vm320_vm1, %v6623_v34  ;;  %6113 = vmatpush1.msk.msra.mxu0 %vm320_vm1, %v6636_v38 }
 0x12a   : > { %6115 = vmatprep.subr.msk.mxu1 %vm320_vm1, %v6645_v41  ;;  %6118 = vmatprep.subr.msk.mxu0 %vm320_vm1, %v6658_v45 }
 0x12b   : > { %4713 = vmatprep.mubr.f32.mxu1 %v6352_v4  ;;  %4784 = vmatprep.mubr.f32.mxu0 %v6352_v4 }
 0x12c   : > { %6111 = vmatmul.mubr.msk.f32.vlgmr.msra.gmra.mxu1 %vm316_vm2, %v6105_v0  ;;  %6114 = vmatmul.mubr.msk.f32.vlgmr.msra.gmra.mxu0 %vm316_vm2, %v6105_v0 }
 0x12d   : > { %6116 = vmatpush1.msk.msra.mxu1 %vm320_vm1, %v6649_v42  ;;  %6119 = vmatpush1.msk.msra.mxu0 %vm320_vm1, %v6662_v46 }
 0x12e   : > { %6121 = vmatprep.subr.msk.mxu1 %vm320_vm1, %v6671_v49  ;;  %6124 = vmatprep.subr.msk.mxu0 %vm320_vm1, %v6689_v53 }
 0x12f   : > { %4855 = vmatprep.mubr.f32.mxu1 %v6352_v4  ;;  %4926 = vmatprep.mubr.f32.mxu0 %v6352_v4 }
 0x130   : > { %6117 = vmatmul.mubr.msk.f32.vlgmr.msra.gmra.mxu1 %vm316_vm2, %v6105_v0  ;;  %6120 = vmatmul.mubr.msk.f32.vlgmr.msra.gmra.mxu0 %vm316_vm2, %v6105_v0 }
 0x131   : > { %6122 = vmatpush1.msk.msra.mxu1 %vm320_vm1, %v6675_v50  ;;  %6125 = vmatpush1.msk.msra.mxu0 %vm320_vm1, %v6698_v55 }
 0x132   : > { %6127 = vmatprep.subr.msk.mxu1 %vm320_vm1, %v4572_v2  ;;  %6131 = vmatprep.subr.msk.mxu0 %vm320_vm1, %v6751_v20 }
 0x133   : > { %4997 = vmatprep.mubr.f32.mxu1 %v6352_v4  ;;  %5068 = vmatprep.mubr.f32.mxu0 %v6352_v4 }
 0x134   : > { %6123 = vmatmul.mubr.msk.f32.vlgmr.msra.gmra.mxu1 %vm316_vm2, %v6105_v0  ;;  %6126 = vmatmul.mubr.msk.f32.vlgmr.msra.gmra.mxu0 %vm316_vm2, %v6105_v0 }
 0x135   : > { %6128 = vmatpush1.msk.msra.mxu1 %vm320_vm1, %v6941_v60  ;;  %6132 = vmatpush1.msk.msra.mxu0 %vm320_vm1, %v6769_v23 }
 0x136   : > { %6134 = vmatprep.subr.msk.mxu1 %vm320_vm1, %v6757_v21  ;;  %6137 = vmatprep.subr.msk.mxu0 %vm320_vm1, %v6777_v30 }
 0x137   : > { %5139 = vmatprep.mubr.f32.mxu1 %v6352_v4  ;;  %5236 = vmatprep.mubr.f32.mxu0 %v6352_v4 }
 0x138   : > { %6129 = vmatmul.mubr.msk.f32.vlgmr.msra.gmra.mxu1 %vm316_vm2, %v6105_v0  ;;  %6133 = vmatmul.mubr.msk.f32.vlgmr.msra.gmra.mxu0 %vm316_vm2, %v6130_v5 }
 0x139   : > { %6135 = vmatpush1.msk.msra.mxu1 %vm320_vm1, %v6774_v28  ;;  %6138 = vmatpush1.msk.msra.mxu0 %vm320_vm1, %v6793_v32 }
 0x13a   : > { %6140 = vmatprep.subr.msk.mxu1 %vm320_vm1, %v6783_v31  ;;  %6143 = vmatprep.subr.msk.mxu0 %vm320_vm1, %v6804_v40 }
 0x13b   : > { %5307 = vmatprep.mubr.f32.mxu1 %v6352_v4  ;;  %5378 = vmatprep.mubr.f32.mxu0 %v6352_v4 }
 0x13c   : > { %6136 = vmatmul.mubr.msk.f32.vlgmr.msra.gmra.mxu1 %vm316_vm2, %v6130_v5  ;;  %6139 = vmatmul.mubr.msk.f32.vlgmr.msra.gmra.mxu0 %vm316_vm2, %v6130_v5 }
 0x13d   : > { %6141 = vmatpush1.msk.msra.mxu1 %vm320_vm1, %v6798_v39  ;;  %6144 = vmatpush1.msk.msra.mxu0 %vm320_vm1, %v6813_v43 }
 0x13e   : > { %6146 = vmatprep.subr.msk.mxu1 %vm320_vm1, %v6823_v51  ;;  %6149 = vmatprep.subr.msk.mxu0 %vm320_vm1, %v6842_v58 }
 0x13f   : > { %5449 = vmatprep.mubr.f32.mxu1 %v6352_v4  ;;  %5520 = vmatprep.mubr.f32.mxu0 %v6352_v4 }
 0x140   : > { %6142 = vmatmul.mubr.msk.f32.vlgmr.msra.gmra.mxu1 %vm316_vm2, %v6130_v5  ;;  %6145 = vmatmul.mubr.msk.f32.vlgmr.msra.gmra.mxu0 %vm316_vm2, %v6130_v5 }
 0x141   : > { %6147 = vmatpush1.msk.msra.mxu1 %vm320_vm1, %v6820_v48  ;;  %6150 = vmatpush1.msk.msra.mxu0 %vm320_vm1, %v6838_v57 }
 0x142   : > { %6152 = vmatprep.subr.msk.mxu1 %vm320_vm1, %v5166_v8  ;;  %5591 = vmatprep.mubr.f32.mxu1 %v6352_v4 }
 0x143   : > { %5662 = vmatprep.mubr.f32.mxu0 %v6352_v4  ;;  %6230 = vset.pattern.permute.xlu0 %v6354_v9 }
 0x144   : > { %6148 = vmatmul.mubr.msk.f32.vlgmr.msra.gmra.mxu1 %vm316_vm2, %v6130_v5  ;;  %6151 = vmatmul.mubr.msk.f32.vlgmr.msra.gmra.mxu0 %vm316_vm2, %v6130_v5 }
 0x145   : > { %6153 = vmatpush1.msk.msra.mxu1 %vm320_vm1, %v6999_v62  ;;  %5733 = vmatprep.mubr.f32.mxu1 %v6352_v4 }
 0x146   : > { %5759 = vperm.xlu0 %6230, %v5756_v10  }
 0x148   : > { %6154 = vmatmul.mubr.msk.f32.vlgmr.msra.gmra.mxu1 %vm316_vm2, %v6130_v5 }
 0x16b   : > { %v490_v13 = vpop.f32.mrf.mxu1 }
 0x16d   : > { %v492_v15 = vpop.f32.mrf.mxu1 }
 0x16f   : > { %v419_v11 = vpop.f32.mrf.mxu0 }
 0x171   : > { %v421_v12 = vpop.f32.mrf.mxu0 }
 0x173   : > { %v561_v14 = vpop.f32.mrf.mxu0 }
 0x175   : > { %v563_v16 = vpop.f32.mrf.mxu0 }
 0x177   : > { %v632_v17 = vpop.f32.mrf.mxu1 }
 0x179   : > { %v634_v24 = vpop.f32.mrf.mxu1 }
 0x17b   : > { %v703_v18 = vpop.f32.mrf.mxu0 }
 0x17d   : > { %v705_v25 = vpop.f32.mrf.mxu0 }
 0x17f   : > { %v774_v33 = vpop.f32.mrf.mxu1 }
 0x181   : > { %v776_v37 = vpop.f32.mrf.mxu1 }
 0x183   : > { %v845_v34 = vpop.f32.mrf.mxu0 }
 0x185   : > { %v847_v38 = vpop.f32.mrf.mxu0 }
 0x187   : > { %v916_v41 = vpop.f32.mrf.mxu1  ;;  %v1022_v42 = vpop.f32.mrf.mxu0 }
 0x188   : > { %v1023_v4 = vadd.f32 %v1022_v42, %v419_v11 }
 0x189   : > { %v918_v45 = vpop.f32.mrf.mxu1  ;;  %v1024_v46 = vpop.f32.mrf.mxu0 }
 0x18a   : > { %v1025_v49 = vadd.f32 %v1024_v46, %v421_v12 }
 0x18b   : > { %v1093_v50 = vpop.f32.mrf.mxu1  ;;  %v1164_v53 = vpop.f32.mrf.mxu0 }
 0x18c   : > { %v1094_v55 = vadd.f32 %v1093_v50, %v490_v13  ;;  %v1165_v3 = vadd.f32 %v1164_v53, %v561_v14 }
 0x18d   : > { %v1095_v19 = vpop.f32.mrf.mxu1  ;;  %v1166_v20 = vpop.f32.mrf.mxu0 }
 0x18e   : > { %v1096_v21 = vadd.f32 %v1095_v19, %v492_v15  ;;  %v1167_v22 = vadd.f32 %v1166_v20, %v563_v16 }
 0x18f   : > { %v1235_v23 = vpop.f32.mrf.mxu1  ;;  %v1306_v26 = vpop.f32.mrf.mxu0 }
 0x190   : > { %v1236_v27 = vadd.f32 %v1235_v23, %v632_v17  ;;  %v1307_v28 = vadd.f32 %v1306_v26, %v703_v18 }
 0x191   : > { %v1237_v30 = vpop.f32.mrf.mxu1  ;;  %v1308_v31 = vpop.f32.mrf.mxu0 }
 0x192   : > { %v1238_v32 = vadd.f32 %v1237_v30, %v634_v24  ;;  %v1309_v35 = vadd.f32 %v1308_v31, %v705_v25 }
 0x193   : > { %v1377_v36 = vpop.f32.mrf.mxu1 }
 0x194   : > { %v1378_v39 = vadd.f32 %v1377_v36, %v774_v33  ;;  %v1448_v40 = vpop.f32.mrf.mxu0 }
 0x195   : > { %v1449_v43 = vadd.f32 %v1448_v40, %v845_v34  ;;  %v1379_v44 = vpop.f32.mrf.mxu1 }
 0x196   : > { %v1380_v47 = vadd.f32 %v1379_v44, %v776_v37  ;;  %v1450_v48 = vpop.f32.mrf.mxu0 }
 0x197   : > { %v1451_v51 = vadd.f32 %v1450_v48, %v847_v38  ;;  %v1519_v54 = vpop.f32.mrf.mxu1 }
 0x198   : > { %v1520_v56 = vadd.f32 %v1519_v54, %v916_v41  ;;  %v1678_v57 = vpop.f32.mrf.mxu0 }
 0x199   : > { %v2180_v58 = vadd.f32 %v1678_v57, %v1023_v4  ;;  %v1521_v59 = vpop.f32.mrf.mxu1 }
 0x19a   : > { %v1522_v6 = vadd.f32 %v1521_v59, %v918_v45  ;;  %v1680_v29 = vpop.f32.mrf.mxu0 }
 0x19b   : > { %v2181_v60 = vadd.f32 %v1680_v29, %v1025_v49  ;;  %v1749_v52 = vpop.f32.mrf.mxu1 }
 0x19c   : > { %v2182_v61 = vadd.f32 %v1749_v52, %v1094_v55  ;;  %v1820_v62 = vpop.f32.mrf.mxu0 }
 0x19d   : > { %v2184_v63 = vadd.f32 %v1820_v62, %v1165_v3  ;;  %v1751_v0 = vpop.f32.mrf.mxu1 }
 0x19e   : > { %v2183_v1 = vadd.f32 %v1751_v0, %v1096_v21  ;;  %v1822_v2 = vpop.f32.mrf.mxu0 }
 0x19f   : > { %v2185_v5 = vadd.f32 %v1822_v2, %v1167_v22  ;;  %v1891_v7 = vpop.f32.mrf.mxu1 }
 0x1a0   : > { %v2186_v8 = vadd.f32 %v1891_v7, %v1236_v27  ;;  %v1962_v9 = vpop.f32.mrf.mxu0 }
 0x1a1   : > { %v2188_v10 = vadd.f32 %v1962_v9, %v1307_v28  ;;  %v1893_v11 = vpop.f32.mrf.mxu1 }
 0x1a2   : > { %v2187_v12 = vadd.f32 %v1893_v11, %v1238_v32  ;;  %v1964_v13 = vpop.f32.mrf.mxu0 }
 0x1a3   : > { %v2189_v14 = vadd.f32 %v1964_v13, %v1309_v35  ;;  %v2033_v15 = vpop.f32.mrf.mxu1 }
 0x1a4   : > { %v2190_v16 = vadd.f32 %v2033_v15, %v1378_v39  ;;  %v2104_v17 = vpop.f32.mrf.mxu0 }
 0x1a5   : > { %v2192_v18 = vadd.f32 %v2104_v17, %v1449_v43  ;;  %v2035_v24 = vpop.f32.mrf.mxu1 }
 0x1a6   : > { %v2191_v25 = vadd.f32 %v2035_v24, %v1380_v47  ;;  %v2106_v33 = vpop.f32.mrf.mxu0 }
 0x1a7   : > { %v2193_v34 = vadd.f32 %v2106_v33, %v1451_v51  ;;  %v2175_v37 = vpop.f32.mrf.mxu1 }
 0x1a8   : > { %v2194_v38 = vadd.f32 %v2175_v37, %v1520_v56  ;;  %v2269_v41 = vpop.f32.mrf.mxu0 }
 0x1a9   : > { %v7173_v42 = vadd.f32 %v2269_v41, %v2180_v58  ;;  %v2177_v4 = vpop.f32.mrf.mxu1 }
 0x1aa   : > { %v2195_v45 = vadd.f32 %v2177_v4, %v1522_v6  ;;  %v2271_v46 = vpop.f32.mrf.mxu0 }
 0x1ab   : > { %v7175_v49 = vadd.f32 %v2271_v46, %v2181_v60  ;;  %v2340_v50 = vpop.f32.mrf.mxu1 }
 0x1ac   : > { %v7177_v53 = vadd.f32 %v2340_v50, %v2182_v61  ;;  %v2411_v55 = vpop.f32.mrf.mxu0 }
 0x1ad   : > { %v7179_v3 = vadd.f32 %v2411_v55, %v2184_v63  ;;  %v2342_v19 = vpop.f32.mrf.mxu1 }
 0x1ae   : > { %v7181_v20 = vadd.f32 %v2342_v19, %v2183_v1  ;;  %v2413_v21 = vpop.f32.mrf.mxu0 }
 0x1af   : > { %v7183_v22 = vadd.f32 %v2413_v21, %v2185_v5  ;;  %v2482_v23 = vpop.f32.mrf.mxu1 }
 0x1b0   : > { %v7185_v26 = vadd.f32 %v2482_v23, %v2186_v8  ;;  %v2553_v27 = vpop.f32.mrf.mxu0 }
 0x1b1   : > { %v7187_v28 = vadd.f32 %v2553_v27, %v2188_v10  ;;  %v2484_v30 = vpop.f32.mrf.mxu1 }
 0x1b2   : > { %v7189_v31 = vadd.f32 %v2484_v30, %v2187_v12  ;;  %v2555_v32 = vpop.f32.mrf.mxu0 }
 0x1b3   : > { %v7191_v35 = vadd.f32 %v2555_v32, %v2189_v14 }
 0x1b4   : > { %v2624_v36 = vpop.f32.mrf.mxu1  ;;  %v2695_v39 = vpop.f32.mrf.mxu0 }
 0x1b5   : > { %v7193_v40 = vadd.f32 %v2624_v36, %v2190_v16  ;;  %v7195_v43 = vadd.f32 %v2695_v39, %v2192_v18 }
 0x1b6   : > { %v2626_v44 = vpop.f32.mrf.mxu1  ;;  %v2697_v47 = vpop.f32.mrf.mxu0 }
 0x1b7   : > { %v7197_v48 = vadd.f32 %v2626_v44, %v2191_v25  ;;  %v7199_v51 = vadd.f32 %v2697_v47, %v2193_v34 }
 0x1b8   : > { %v2766_v54 = vpop.f32.mrf.mxu1  ;;  %v2864_v56 = vpop.f32.mrf.mxu0 }
 0x1b9   : > { %v7201_v57 = vadd.f32 %v2766_v54, %v2194_v38 }
 0x1ba   : > { %v2768_v58 = vpop.f32.mrf.mxu1  ;;  %v2866_v59 = vpop.f32.mrf.mxu0 }
 0x1bb   : > { %v7203_v6 = vadd.f32 %v2768_v58, %v2195_v45 }
 0x1bc   : > { %v2935_v29 = vpop.f32.mrf.mxu1  ;;  %v3006_v60 = vpop.f32.mrf.mxu0 }
 0x1be   : > { %v2937_v52 = vpop.f32.mrf.mxu1  ;;  %v3008_v61 = vpop.f32.mrf.mxu0 }
 0x1c0   : > { %v3077_v62 = vpop.f32.mrf.mxu1  ;;  %v3148_v63 = vpop.f32.mrf.mxu0 }
 0x1c2   : > { %v3079_v0 = vpop.f32.mrf.mxu1  ;;  %v3150_v1 = vpop.f32.mrf.mxu0 }
 0x1c4   : > { %v3219_v2 = vpop.f32.mrf.mxu1  ;;  %v3290_v5 = vpop.f32.mrf.mxu0 }
 0x1c6   : > { %v3221_v7 = vpop.f32.mrf.mxu1  ;;  %v3292_v8 = vpop.f32.mrf.mxu0 }
 0x1c8   : > { %v3361_v9 = vpop.f32.mrf.mxu1  ;;  %v3458_v10 = vpop.f32.mrf.mxu0 }
 0x1ca   : > { %v3363_v11 = vpop.f32.mrf.mxu1  ;;  %v3460_v12 = vpop.f32.mrf.mxu0 }
 0x1cc   : > { %v3529_v13 = vpop.f32.mrf.mxu1  ;;  %v3600_v14 = vpop.f32.mrf.mxu0 }
 0x1ce   : > { %v3531_v15 = vpop.f32.mrf.mxu1  ;;  %v3602_v16 = vpop.f32.mrf.mxu0 }
 0x1d0   : > { %v7205_v17 = vpop.f32.mrf.mxu1  ;;  %v7207_v18 = vpop.f32.mrf.mxu0 }
 0x1d2   : > { %v7209_v24 = vpop.f32.mrf.mxu1  ;;  %v7211_v25 = vpop.f32.mrf.mxu0 }
 0x1d4   : > { %v7213_v33 = vpop.f32.mrf.mxu1  ;;  %v7215_v34 = vpop.f32.mrf.mxu0 }
 0x1d6   : > { %v7217_v37 = vpop.f32.mrf.mxu1  ;;  %v7219_v38 = vpop.f32.mrf.mxu0 }
 0x1d7   : > { %7416 = vst [vmem:[#allocation8_spill] sm:$0xff] %v7217_v37  ;;  %7417 = vst [vmem:[#allocation9_spill] sm:$0xff] %v7219_v38  ;;  %v3372_v38 = vadd.f32 %v3077_v62, %v7185_v26 }
 0x1d8   : > { %v7221_v41 = vpop.f32.mrf.mxu1  ;;  %v4049_v4 = vpop.f32.mrf.mxu0 }
 0x1d9   : > { %7418 = vst [vmem:[#allocation10_spill] sm:$0xff] %v7221_v41 }
 0x1da   : > { %v7223_v45 = vpop.f32.mrf.mxu1  ;;  %v4051_v46 = vpop.f32.mrf.mxu0 }
 0x1db   : > { %7419 = vst [vmem:[#allocation11_spill] sm:$0xff] %v7223_v45 }
 0x1dc   : > { %v7225_v50 = vpop.f32.mrf.mxu1  ;;  %v7227_v55 = vpop.f32.mrf.mxu0 }
 0x1de   : > { %v7229_v19 = vpop.f32.mrf.mxu1  ;;  %v7231_v21 = vpop.f32.mrf.mxu0 }
 0x1df   : > { %7420 = vst [vmem:[#allocation12_spill] sm:$0xff] %v7229_v19  ;;  %7421 = vst [vmem:[#allocation13_spill] sm:$0xff] %v7231_v21  ;;  %v3371_v19 = vadd.f32 %v3008_v61, %v7183_v22  ;;  %v3379_v22 = vadd.f32 %v3292_v8, %v7199_v51  ;;  %v3966_v51 = vadd.f32 %v7205_v17, %v3372_v38 }
 0x1e0   : > { %v7233_v23 = vpop.f32.mrf.mxu1  ;;  %v7235_v27 = vpop.f32.mrf.mxu0 }
 0x1e1   : > { %7422 = vst [vmem:[#allocation14_spill] sm:$0xff] %v7233_v23  ;;  %7423 = vst [vmem:[#allocation15_spill] sm:$0xff] %v7235_v27 }
 0x1e2   : > { %v7237_v30 = vpop.f32.mrf.mxu1  ;;  %v7239_v32 = vpop.f32.mrf.mxu0 }
 0x1e3   : > { %7424 = vst [vmem:[#allocation16_spill] sm:$0xff] %v7237_v30  ;;  %7425 = vst [vmem:[#allocation17_spill] sm:$0xff] %v7239_v32 }
 0x1e4   : > { %v7241_v36 = vpop.f32.mrf.mxu1  ;;  %v7243_v39 = vpop.f32.mrf.mxu0 }
 0x1e5   : > { %7426 = vst [vmem:[#allocation18_spill] sm:$0xff] %v7241_v36  ;;  %7427 = vst [vmem:[#allocation19_spill] sm:$0xff] %v7243_v39  ;;  %v3366_v39 = vadd.f32 %v2864_v56, %v7173_v42  ;;  %v3373_v42 = vadd.f32 %v3079_v0, %v7189_v31  ;;  %v7283_v31 = vadd.f32 %v3363_v11, %v7203_v6 }
 0x1e6   : > { %v7245_v44 = vpop.f32.mrf.mxu1  ;;  %v7247_v47 = vpop.f32.mrf.mxu0  ;;  %v7436_v17 = vld [vmem:[#allocation12_spill] sm:$0xff] }
 0x1e7   : > { %7428 = vst [vmem:[#allocation20_spill] sm:$0xff] %v7245_v44  ;;  %7429 = vst [vmem:[#allocation21_spill] sm:$0xff] %v7247_v47  ;;  %v3367_v44 = vadd.f32 %v2866_v59, %v7175_v49  ;;  %v3368_v47 = vadd.f32 %v2935_v29, %v7177_v53  ;;  %v3375_v49 = vadd.f32 %v3150_v1, %v7191_v35 }
 0x1e8   : > { %v7249_v54 = vpop.f32.mrf.mxu1  ;;  %v4644_v58 = vpop.f32.mrf.mxu0  ;;  %v3960_v56 = vadd.f32 %v3458_v10, %v3366_v39  ;;  %v3376_v53 = vadd.f32 %v3219_v2, %v7193_v40  ;;  %v3967_v6 = vadd.f32 %v7209_v24, %v3373_v42  ;;  %v7437_v24 = vld [vmem:[#allocation13_spill] sm:$0xff] }
 0x1e9   : > { %7430 = vst [vmem:[#allocation22_spill] sm:$0xff] %v7249_v54  ;;  %v3370_v54 = vadd.f32 %v3006_v60, %v7179_v3  ;;  %v3378_v3 = vadd.f32 %v3290_v5, %v7195_v43  ;;  %v3961_v35 = vadd.f32 %v3460_v12, %v3367_v44  ;;  %v3962_v60 = vadd.f32 %v3529_v13, %v3368_v47  ;;  %v7434_v13 = vld [vmem:[#allocation8_spill] sm:$0xff] }
 0x1ea   : > { %v7251_v45 = vpop.f32.mrf.mxu1  ;;  %v4646_v23 = vpop.f32.mrf.mxu0  ;;  %v4551_v29 = vadd.f32 %v4049_v4, %v3960_v56  ;;  %v3965_v43 = vadd.f32 %v3602_v16, %v3371_v19  ;;  %v3969_v1 = vadd.f32 %v7211_v25, %v3375_v49  ;;  %v3970_v2 = vadd.f32 %v7213_v33, %v3376_v53  ;;  %v7439_v19 = vld [vmem:[#allocation14_spill] sm:$0xff]  ;;  %v7442_v56 = vld [vmem:[#allocation16_spill] sm:$0xff] }
 0x1eb   : > { %7431 = vst [vmem:[#allocation23_spill] sm:$0xff] %v7251_v45  ;;  %v3369_v45 = vadd.f32 %v2937_v52, %v7181_v20  ;;  %v3377_v20 = vadd.f32 %v3221_v7, %v7197_v48  ;;  %v3964_v40 = vadd.f32 %v3600_v14, %v3370_v54  ;;  %v3972_v5 = vadd.f32 %v7215_v34, %v3378_v3  ;;  %v7443_v3 = vld [vmem:[#allocation17_spill] sm:$0xff] }
 0x1ec   : > { %v4715_v41 = vpop.f32.mrf.mxu1  ;;  %v4786_v27 = vpop.f32.mrf.mxu0  ;;  %v5146_v0 = vadd.f32 %v4644_v58, %v4551_v29  ;;  %v4556_v25 = vadd.f32 %v7437_v24, %v3965_v43  ;;  %v4558_v53 = vadd.f32 %v7442_v56, %v3967_v6 }
 0x1ed   : > { %v3963_v52 = vadd.f32 %v3531_v15, %v3369_v45  ;;  %v4555_v10 = vadd.f32 %v7227_v55, %v3964_v40  ;;  %v3971_v14 = vadd.f32 %v7434_v13, %v3377_v20  ;;  %v7435_v15 = vld [vmem:[#allocation9_spill] sm:$0xff]  ;;  %v4560_v20 = vadd.f32 %v7443_v3, %v3969_v1 }
 0x1ee   : > { %v4717_v21 = vpop.f32.mrf.mxu1  ;;  %v7253_v30 = vpop.f32.mrf.mxu0  ;;  %v3973_v16 = vadd.f32 %v7435_v15, %v3379_v22  ;;  %v7447_v13 = vld [vmem:[#allocation20_spill] sm:$0xff]  ;;  %v7448_v15 = vld [vmem:[#allocation21_spill] sm:$0xff] }
 0x1ef   : > { %7432 = vst [vmem:[#allocation24_spill] sm:$0xff] %v7253_v30  ;;  %v5150_v4 = vadd.f32 %v4786_v27, %v4555_v10 }
 0x1f0   : > { %v7255_v32 = vpop.f32.mrf.mxu1  ;;  %v7257_v36 = vpop.f32.mrf.mxu0 }
 0x1f1   : > { %7433 = vst [vmem:[#allocation25_spill] sm:$0xff] %v7257_v36  ;;  %v3374_v36 = vadd.f32 %v3148_v63, %v7187_v28  ;;  %v3380_v28 = vadd.f32 %v3361_v9, %v7201_v57  ;;  %v4552_v63 = vadd.f32 %v4051_v46, %v3961_v35  ;;  %v7292_v57 = vpop.permute.xlu0 %5759  ;;  %v4553_v9 = vadd.f32 %v7225_v50, %v3962_v60  ;;  %v7438_v50 = vld [vmem:[#allocation10_spill] sm:$0xff] }
 0x1f2   : > { %v7266_v37 = vpop.f32.mrf.mxu1  ;;  %v7268_v30 = vpop.f32.mrf.mxu0 }
 0x1f3   : > { %v3968_v62 = vadd.f32 %v7207_v18, %v3374_v36  ;;  %v5147_v11 = vadd.f32 %v4646_v23, %v4552_v63  ;;  %v4554_v18 = vadd.f32 %v7436_v17, %v3963_v52  ;;  %v5148_v38 = vadd.f32 %v4715_v41, %v4553_v9  ;;  %v7440_v36 = vld [vmem:[#allocation15_spill] sm:$0xff] }
 0x1f4   : > { %v7277_v26 = vpop.f32.mrf.mxu1  ;;  %v7279_v59 = vpop.f32.mrf.mxu0  ;;  %v3974_v55 = vadd.f32 %v7438_v50, %v3380_v28  ;;  %v4557_v23 = vadd.f32 %v7439_v19, %v3966_v51  ;;  %v7445_v51 = vld [vmem:[#allocation18_spill] sm:$0xff]  ;;  %v7446_v63 = vld [vmem:[#allocation19_spill] sm:$0xff]  ;;  %v5153_v6 = vadd.f32 %v7266_v37, %v4558_v53 }
 0x1f5   : > { %v4559_v39 = vadd.f32 %v7440_v36, %v3968_v62  ;;  %v5149_v44 = vadd.f32 %v4717_v21, %v4554_v18  ;;  %v4561_v62 = vadd.f32 %v7445_v51, %v3970_v2  ;;  %v4562_v2 = vadd.f32 %v7447_v13, %v3971_v14  ;;  %v7449_v14 = vld [vmem:[#allocation11_spill] sm:$0xff] }
 0x1f6   : > { %v7285_v61 = vpop.f32.mrf.mxu1  ;;  %v7287_v48 = vpop.f32.mrf.mxu0  ;;  %v7441_v58 = vld [vmem:[#allocation24_spill] sm:$0xff]  ;;  %v5152_v21 = vadd.f32 %v7255_v32, %v4557_v23  ;;  %v5155_v32 = vadd.f32 %v7268_v30, %v4560_v20 }
 0x1f7   : > { %v5151_v42 = vadd.f32 %v7441_v58, %v4556_v25  ;;  %v5156_v37 = vadd.f32 %v7277_v26, %v4561_v62 }
 0x1f8   : > { %v7298_v7 = vpop.f32.mrf.mxu1  ;;  %v5238_v8 = vpop.f32.mrf.mxu0  ;;  %v7444_v22 = vld [vmem:[#allocation25_spill] sm:$0xff] }
 0x1f9   : > { %v5740_v12 = vadd.f32 %v5238_v8, %v5146_v0  ;;  %v5154_v28 = vadd.f32 %v7444_v22, %v4559_v39  ;;  %v4563_v0 = vadd.f32 %v7446_v63, %v3972_v5  ;;  %v4564_v5 = vadd.f32 %v7448_v15, %v3973_v16  ;;  %v7450_v16 = vld [vmem:[#allocation22_spill] sm:$0xff]  ;;  %v7451_v39 = vld [vmem:[#allocation23_spill] sm:$0xff] }
 0x1fa   : > { %v7306_v33 = vpop.f32.mrf.mxu1  ;;  %v5240_v34 = vpop.f32.mrf.mxu0  ;;  %v4565_v26 = vadd.f32 %v7450_v16, %v3974_v55 }
 0x1fb   : > { %v5741_v45 = vadd.f32 %v5240_v34, %v5147_v11  ;;  %v5762_v46 = vadd.f32 %v7292_v57, %v5740_v12  ;;  %v5158_v30 = vadd.f32 %v7279_v59, %v4563_v0  ;;  %v5157_v59 = vadd.f32 %v7285_v61, %v4562_v2 }
 0x1fc   : > { %v5309_v47 = vpop.f32.mrf.mxu1  ;;  %v5380_v54 = vpop.f32.mrf.mxu0  ;;  %v5160_v55 = vadd.f32 %v7298_v7, %v4565_v26 }
 0x1fd   : > { %v5763_v49 = vadd.f32 %v7292_v57, %v5741_v45  ;;  %5778 = vst [vmem:[%s7314_s9] sm:$0xff] %v5762_v46  ;;  %v5742_v41 = vadd.f32 %v5309_v47, %v5148_v38  ;;  %v5744_v27 = vadd.f32 %v5380_v54, %v5150_v4  ;;  %v3975_v4 = vadd.f32 %v7449_v14, %v7283_v31 }
 0x1fe   : > { %v5311_v35 = vpop.f32.mrf.mxu1  ;;  %v5382_v29 = vpop.f32.mrf.mxu0  ;;  %v5159_v45 = vadd.f32 %v7287_v48, %v4564_v5 }
 0x1ff   : > { %5779 = vst [vmem:[%s7314_s9 + $0x8] sm:$0xff] %v5763_v49  ;;  %v5764_v60 = vadd.f32 %v7292_v57, %v5742_v41  ;;  %v5766_v40 = vadd.f32 %v7292_v57, %v5744_v27  ;;  %v5743_v52 = vadd.f32 %v5311_v35, %v5149_v44  ;;  %v5745_v43 = vadd.f32 %v5382_v29, %v5151_v42 }
 0x200   : > { %v5451_v1 = vpop.f32.mrf.mxu1  ;;  %v5522_v8 = vpop.f32.mrf.mxu0  ;;  %v4566_v44 = vadd.f32 %v7451_v39, %v3975_v4 }
 0x201   : > { %5780 = vst [vmem:[%s7314_s9 + $0x10] sm:$0xff] %v5764_v60  ;;  %5782 = vst [vmem:[%s7314_s9 + $0x20] sm:$0xff] %v5766_v40  ;;  %v5765_v9 = vadd.f32 %v7292_v57, %v5743_v52  ;;  %v5767_v10 = vadd.f32 %v7292_v57, %v5745_v43  ;;  %v5746_v11 = vadd.f32 %v5451_v1, %v5152_v21 }
 0x202   : > { %v5748_v12 = vadd.f32 %v5522_v8, %v5154_v28  ;;  %v5453_v17 = vpop.f32.mrf.mxu1  ;;  %v5524_v18 = vpop.f32.mrf.mxu0  ;;  %v5161_v41 = vadd.f32 %v7306_v33, %v4566_v44 }
 0x203   : > { %5781 = vst [vmem:[%s7314_s9 + $0x18] sm:$0xff] %v5765_v9  ;;  %5783 = vst [vmem:[%s7314_s9 + $0x28] sm:$0xff] %v5767_v10  ;;  %v5768_v24 = vadd.f32 %v7292_v57, %v5746_v11  ;;  %v5747_v34 = vadd.f32 %v5453_v17, %v5153_v6  ;;  %v5749_v38 = vadd.f32 %v5524_v18, %v5155_v32 }
 0x204   : > { %v5770_v25 = vadd.f32 %v7292_v57, %v5748_v12  ;;  %v5593_v46 = vpop.f32.mrf.mxu1  ;;  %v5664_v50 = vpop.f32.mrf.mxu0 }
 0x205   : > { %5784 = vst [vmem:[%s7314_s9 + $0x30] sm:$0xff] %v5768_v24  ;;  %v5769_v19 = vadd.f32 %v7292_v57, %v5747_v34  ;;  %v5771_v23 = vadd.f32 %v7292_v57, %v5749_v38  ;;  %v5750_v36 = vadd.f32 %v5593_v46, %v5156_v37  ;;  %v5752_v31 = vadd.f32 %v5664_v50, %v5158_v30 }
 0x206   : > { %5786 = vst [vmem:[%s7314_s9 + $0x40] sm:$0xff] %v5770_v25  ;;  %v5595_v47 = vpop.f32.mrf.mxu1  ;;  %v5666_v61 = vpop.f32.mrf.mxu0 }
 0x207   : > { %5785 = vst [vmem:[%s7314_s9 + $0x38] sm:$0xff] %v5769_v19  ;;  %5787 = vst [vmem:[%s7314_s9 + $0x48] sm:$0xff] %v5771_v23  ;;  %v5772_v48 = vadd.f32 %v7292_v57, %v5750_v36  ;;  %v5774_v54 = vadd.f32 %v7292_v57, %v5752_v31  ;;  %v5751_v58 = vadd.f32 %v5595_v47, %v5157_v59 }
 0x208   : > { %v5753_v42 = vadd.f32 %v5666_v61, %v5159_v45  ;;  %v5735_v49 = vpop.f32.mrf.mxu1 }
 0x209   : > { %5788 = vst [vmem:[%s7314_s9 + $0x50] sm:$0xff] %v5772_v48  ;;  %5790 = vst [vmem:[%s7314_s9 + $0x60] sm:$0xff] %v5774_v54  ;;  %v5773_v7 = vadd.f32 %v7292_v57, %v5751_v58  ;;  %v5754_v56 = vadd.f32 %v5735_v49, %v5160_v55 }
 0x20a   : > { %v5775_v27 = vadd.f32 %v7292_v57, %v5753_v42  ;;  %v5737_v53 = vpop.f32.mrf.mxu1 }
 0x20b   : > { %5789 = vst [vmem:[%s7314_s9 + $0x58] sm:$0xff] %v5773_v7  ;;  %v5776_v3 = vadd.f32 %v7292_v57, %v5754_v56  ;;  %v5755_v20 = vadd.f32 %v5737_v53, %v5161_v41 }
 0x20c   : > { %5791 = vst [vmem:[%s7314_s9 + $0x68] sm:$0xff] %v5775_v27 }
 0x20d   : > { %5792 = vst [vmem:[%s7314_s9 + $0x70] sm:$0xff] %v5776_v3  ;;  %v5777_v33 = vadd.f32 %v7292_v57, %v5755_v20 }
 0x20f   : > { %5793 = vst [vmem:[%s7314_s9 + $0x78] sm:$0xff] %v5777_v33 }
 0x210   : > { %6281 = shalt.err (!%p6278_p3)
}
 0x211   : > { %s6282_s24 = scalar_lea.hbm %s5809_s21, 2048  ;;  %s6286_s5 = scalar_lea.hbm %s7410_s3, 4096 }
 0x212   : > { %p6283_p5 = scmp.ne.s32.totalorder %s5809_s21, %s6282_s24  ;;  %p6287_p7 = scmp.lt.s32.totalorder %s5809_s21, %s7410_s3 }
 0x213   : > { %p6288_p10 = scmp.lt.s32.totalorder %s6286_s5, %s6282_s24 }
 0x214   : > { %p6284_p6 = pnand %p6283_p5, %p6427_p9 }
 0x215   : > { %p6289_p13 = por %p6288_p10, %p6287_p7 }
 0x216   : > { %p6285_p4 = pneg %p6284_p6 }
 0x218   : > { %p6290_p8 = pnand %p6289_p13, %p6285_p4 }
 0x21a   : > { %6293 = shalt.err (!%p6290_p8)
}
 0x21b   : > { %6166 = dma.vmem_to_hbm [thread:$0]  (%p6427_p9), %s5812_s11, 2048, %s5809_s21, %s5795_s23  }
 0x21c PF: > { %s5823_s8 = sand.u32 1, %s6328_s12   ;;  %p7452_p11 = scmp.ne.s32.totalorder %s7414_s27, 0 }
 0x21d   : > { %p7453_p12 = scmp.ge.s32.totalorder %s6348_s17, 2  ;;  %s5824_s9 = scalar_lea.sflag [#allocation4], %s5823_s8 }
 0x21f   : > { %p6173_p0 = pnand %p7453_p12, %p7452_p11 }
 0x221   : > { %p6174_p1 = pneg %p6173_p0 }
 0x223   : > { %6323 = dma.done.wait (%p6174_p1), %s5824_s9, 2048  }
 0x224   : > { %6325 = vsyncadd (%p6174_p1), %s5824_s9, 4294965248  ;;  %s19_s17 = sadd.s32 1, %s6348_s17   ;;  %s7454_s12 = smov %s6332_s13 }
 0x225   : > { %p16_p2 = scmp.ge.s32.totalorder %s19_s17, 4   ;;  %s7455_s13 = smov %s6336_s14 }
 0x226   : > { %s7456_s14 = smov %s6432_s26  ;;  %s7457_s15 = smov %s6344_s16 }
 0x227   : > { %s7458_s16 = smov %s7460_s20  ;;  %18 = sbr.rel (!%p16_p2) target bundleno = 6 (0x6), region = 91 }
 0x22c   :  { %5829 = vsyncpa [#allocation3], 1 }
 0x22d   :  { %5831 = vsyncpa [#allocation3 + $0x1], 1 }
 0x22e   :  { %5832 = vsyncpa [#allocation4], 1 }
 0x22f   :  { %5834 = vsyncpa [#allocation4 + $0x1], 1 }

</bundles_post_ra>
